<compile_context>
chip_gen: v7x
topology: tpu7x:2x2x1
jax: 0.10.0
libtpu: 0.0.40
codegen_flags: <defaults>
</compile_context>

<pallas_src>
import functools

import numpy as np
import jax
import jax.numpy as jnp
from jax.experimental import pallas as pl
from jax.experimental.pallas import tpu as pltpu


def _round_up(x, m):
    return (x + m - 1) // m * m


def _pick_cout_tile(cout):
    """Output-channel tile: full if small, else a multiple-of-8 divisor."""
    if cout <= 8:
        return cout
    for t in (64, 32, 16, 8):
        if cout % t == 0:
            return t
    return cout


def _tap_offsets_and_masks(D, H, W, KD, KH, KW, pd, ph, pw):
    """Flat spatial offsets + validity masks per conv tap (trace-time numpy constants)."""
    S = D * H * W
    s = np.arange(S)
    d_idx, h_idx, w_idx = s // (H * W), (s // W) % H, s % W
    offsets, masks = [], []
    for kd in range(KD):
        dd = kd - pd
        for kh in range(KH):
            dh = kh - ph
            for kw in range(KW):
                dw = kw - pw
                offsets.append(dd * (H * W) + dh * W + dw)
                masks.append((d_idx + dd >= 0) & (d_idx + dd < D)
                             & (h_idx + dh >= 0) & (h_idx + dh < H)
                             & (w_idx + dw >= 0) & (w_idx + dw < W))
    return tuple(offsets), np.stack(masks)          # (T,), (T, S) bool


def _norm_act_store(acc, b_ref, g_ref, be_ref, o_ref, eps, slope):
    """bias + InstanceNorm over spatial (biased var, eps in rsqrt) + affine + LeakyReLU."""
    acc = acc + b_ref[...]                                     # (Ct, 1) bcast
    mean = jnp.mean(acc, axis=1, keepdims=True)
    cen = acc - mean
    var = jnp.mean(cen * cen, axis=1, keepdims=True)
    y = cen * jax.lax.rsqrt(var + eps)
    y = y * g_ref[...] + be_ref[...]
    o_ref[0] = jnp.where(y >= 0, y, slope * y).astype(o_ref.dtype)


def _stage_kernel_fused(x_ref, w_ref, m_ref, b_ref, g_ref, be_ref, o_ref, xcol_ref, *,
                        S, cin_pad, offsets, full_taps, eps, slope):
    """Fused conv3d (same) + InstanceNorm + LeakyReLU via a single MXU matmul.

    x_ref    : (1, Cin_pad, S)        flattened spatial, S = D*H*W
    w_ref    : (Ct, T*Cin_pad)        column = tap*Cin_pad + ci
    m_ref    : (T, S)                 per-tap boundary masks (0/1)
    b/g/be   : (Ct, 1)
    o_ref    : (1, Ct, S)
    xcol_ref : (T*Cin_pad, S) scratch (tap-im2col), reused across Cout tiles
    """
    # Build the tap-im2col scratch once per sample (channel-tile axis is innermost).
    @pl.when(pl.program_id(1) == 0)
    def _build():
        x = x_ref[0]                                           # (Cin_pad, S)
        for t, off in enumerate(offsets):
            # shifted[:, s] == x[:, s + off] (mod S); wrap-around zeroed by mask.
            shifted = x if off == 0 else pltpu.roll(x, shift=(-off) % S, axis=1)
            if not full_taps[t]:
                shifted = shifted * m_ref[pl.ds(t, 1), :]      # (1, S) bcast
            xcol_ref[pl.ds(t * cin_pad, cin_pad), :] = shifted

    # One big MXU matmul: contraction depth T*Cin_pad instead of Cin.
    acc = jnp.dot(w_ref[...], xcol_ref[...], preferred_element_type=jnp.float32)
    _norm_act_store(acc, b_ref, g_ref, be_ref, o_ref, eps, slope)


def _stage_kernel_taps(x_ref, w_ref, m_ref, b_ref, g_ref, be_ref, o_ref, *,
                       S, offsets, full_taps, eps, slope):
    """Per-tap fallback (no im2col scratch) for volumes too large for the fused path.

    x_ref : (1, Cin_pad, S);  w_ref : (T, Ct, Cin_pad);  m_ref : (T, S)
    """
    x = x_ref[0]                                               # (Cin_pad, S)
    ct = o_ref.shape[1]
    acc = jnp.zeros((ct, S), jnp.float32)
    for t, off in enumerate(offsets):
        shifted = x if off == 0 else pltpu.roll(x, shift=(-off) % S, axis=1)
        if not full_taps[t]:
            shifted = shifted * m_ref[pl.ds(t, 1), :]
        acc = acc + jnp.dot(w_ref[t], shifted, preferred_element_type=jnp.float32)
    _norm_act_store(acc, b_ref, g_ref, be_ref, o_ref, eps, slope)


def conv3d_instnorm_lrelu(x, w, b, gamma, beta, *, padding, eps=1e-5,
                          negative_slope=0.01, force_fallback=False):
    """One Conv3d + InstanceNorm3d(affine) + LeakyReLU stage (single pallas_call)."""
    N, Cin, D, H, W = x.shape
    Cout, Cin_w, KD, KH, KW = w.shape
    assert Cin_w == Cin, (Cin_w, Cin)
    if isinstance(padding, int):
        pd = ph = pw = padding
    else:
        pd, ph, pw = padding
    assert KD == 2 * pd + 1 and KH == 2 * ph + 1 and KW == 2 * pw + 1, (
        "only 'same' convolutions (odd kernel, padding=(K-1)//2) are supported")

    S = D * H * W
    T = KD * KH * KW
    cin_pad = _round_up(Cin, 8)

    offsets, masks_np = _tap_offsets_and_masks(D, H, W, KD, KH, KW, pd, ph, pw)
    full_taps = tuple(bool(m.all()) for m in masks_np)
    masks = jnp.asarray(masks_np, dtype=x.dtype)               # (T, S) constant

    # Pure row-major reinterprets / tiny parameter reshapes (no extra HBM pass
    # on the activation tensor beyond the optional channel zero-pad).
    x_flat = x.reshape(N, Cin, S)
    if cin_pad != Cin:
        x_flat = jnp.pad(x_flat, ((0, 0), (0, cin_pad - Cin), (0, 0)))
        w = jnp.pad(w, ((0, 0), (0, cin_pad - Cin), (0, 0), (0, 0), (0, 0)))
    b2 = b.reshape(Cout, 1).astype(jnp.float32)
    g2 = gamma.reshape(Cout, 1).astype(jnp.float32)
    be2 = beta.reshape(Cout, 1).astype(jnp.float32)

    ct = _pick_cout_tile(Cout)
    n_ct = Cout // ct
    dsize = jnp.dtype(x.dtype).itemsize

    xcol_bytes = T * cin_pad * S * dsize
    use_fused = (not force_fallback) and xcol_bytes <= (12 << 20)

    cost = pl.CostEstimate(
        flops=2 * N * Cout * cin_pad * S * T,
        transcendentals=N * Cout,                 # one rsqrt per (n, c)
        bytes_accessed=(x_flat.size + N * Cout * S) * dsize
        + N * n_ct * Cout * cin_pad * T * dsize + T * S * dsize + 3 * Cout * 4)

    common = dict(
        out_shape=jax.ShapeDtypeStruct((N, Cout, S), x.dtype),
        grid=(N, n_ct),
        out_specs=pl.BlockSpec((1, ct, S), lambda n, c: (n, c, 0)),
        cost_estimate=cost,
    )
    param_specs = [pl.BlockSpec((ct, 1), lambda n, c: (c, 0))] * 3

    if use_fused:
        # (Cout, T*Cin_pad) with column index tap*Cin_pad + ci (matches scratch rows).
        w2 = jnp.transpose(w, (0, 2, 3, 4, 1)).reshape(Cout, T * cin_pad)
        kernel = functools.partial(
            _stage_kernel_fused, S=S, cin_pad=cin_pad, offsets=offsets,
            full_taps=full_taps, eps=eps, slope=negative_slope)
        y_flat = pl.pallas_call(
            kernel,
            in_specs=[
                pl.BlockSpec((1, cin_pad, S), lambda n, c: (n, 0, 0)),
                pl.BlockSpec((ct, T * cin_pad), lambda n, c: (c, 0)),
                pl.BlockSpec((T, S), lambda n, c: (0, 0)),
            ] + param_specs,
            scratch_shapes=[pltpu.VMEM((T * cin_pad, S), x.dtype)],
            compiler_params=pltpu.CompilerParams(
                dimension_semantics=("parallel", "arbitrary")),
            **common,
        )(x_flat, w2, masks, b2, g2, be2)
    else:
        w_taps = jnp.transpose(w, (2, 3, 4, 0, 1)).reshape(T, Cout, cin_pad)
        kernel = functools.partial(
            _stage_kernel_taps, S=S, offsets=offsets,
            full_taps=full_taps, eps=eps, slope=negative_slope)
        y_flat = pl.pallas_call(
            kernel,
            in_specs=[
                pl.BlockSpec((1, cin_pad, S), lambda n, c: (n, 0, 0)),
                pl.BlockSpec((T, ct, cin_pad), lambda n, c: (0, c, 0)),
                pl.BlockSpec((T, S), lambda n, c: (0, 0)),
            ] + param_specs,
            compiler_params=pltpu.CompilerParams(
                dimension_semantics=("parallel", "parallel")),
            **common,
        )(x_flat, w_taps, masks, b2, g2, be2)

    return y_flat.reshape(N, Cout, D, H, W)


def cov_dropout_norm_nonlin(x, w0, b0, g0, be0, w1, b1, g1, be1, *,
                            padding=1, eps=1e-5, drop_rate=0.0):
    """Forward of CovDropoutNormNonlin (drop_rate=0 path, as in the module default)."""
    del drop_rate  # TODO(synk): training-mode Dropout3d not implemented (identity here).
    y = conv3d_instnorm_lrelu(x, w0, b0, g0, be0, padding=padding, eps=eps)
    y = conv3d_instnorm_lrelu(y, w1, b1, g1, be1, padding=padding, eps=eps)
    return y


# ---------------------------------------------------------------------------
# Plain-JAX reference (mirrors the PyTorch module) for correctness checking.
# ---------------------------------------------------------------------------
def _ref_stage(x, w, b, gamma, beta, padding, eps=1e-5, slope=0.01):
    y = jax.lax.conv_general_dilated(
        x, w, window_strides=(1, 1, 1),
        padding=[(padding, padding)] * 3,
        dimension_numbers=("NCDHW", "OIDHW", "NCDHW"))
    y = y + b[None, :, None, None, None]
    mean = y.mean(axis=(2, 3, 4), keepdims=True)
    var = ((y - mean) ** 2).mean(axis=(2, 3, 4), keepdims=True)
    y = (y - mean) * jax.lax.rsqrt(var + eps)
    y = y * gamma[None, :, None, None, None] + beta[None, :, None, None, None]
    return jnp.where(y >= 0, y, slope * y)


if __name__ == "__main__":
    key = jax.random.PRNGKey(0)
    N, Cin, Cout = 2, 4, 8
    D = H = W = 8          # S = 512 (lane-dense, multiple of 128)
    K, P = 3, 1

    ks = jax.random.split(key, 9)
    x = jax.random.normal(ks[0], (N, Cin, D, H, W), dtype=jnp.float32)
    w0 = 0.1 * jax.random.normal(ks[1], (Cout, Cin, K, K, K), dtype=jnp.float32)
    b0 = 0.1 * jax.random.normal(ks[2], (Cout,), dtype=jnp.float32)
    g0 = 1.0 + 0.1 * jax.random.normal(ks[3], (Cout,), dtype=jnp.float32)
    be0 = 0.1 * jax.random.normal(ks[4], (Cout,), dtype=jnp.float32)
    w1 = 0.1 * jax.random.normal(ks[5], (Cout, Cout, K, K, K), dtype=jnp.float32)
    b1 = 0.1 * jax.random.normal(ks[6], (Cout,), dtype=jnp.float32)
    g1 = 1.0 + 0.1 * jax.random.normal(ks[7], (Cout,), dtype=jnp.float32)
    be1 = 0.1 * jax.random.normal(ks[8], (Cout,), dtype=jnp.float32)

    # Full two-stage forward (fused single-matmul path).
    fwd = jax.jit(functools.partial(cov_dropout_norm_nonlin, padding=P, eps=1e-5))
    y = jax.block_until_ready(fwd(x, w0, b0, g0, be0, w1, b1, g1, be1))
    assert y.shape == (N, Cout, D, H, W), y.shape

    # Mirrors the module's NaN flag (host-side, since in-kernel print is a side effect).
    if bool(jnp.any(jnp.isnan(y))):
        print("NaN occur!")

    ref = _ref_stage(_ref_stage(x, w0, b0, g0, be0, P), w1, b1, g1, be1, P)
    max_err = float(jnp.max(jnp.abs(y - ref)))
    assert jnp.allclose(y, ref, atol=2e-4, rtol=2e-4), max_err

    # Also exercise the per-tap fallback kernel (used for very large volumes).
    fb = jax.jit(functools.partial(conv3d_instnorm_lrelu, padding=P, eps=1e-5,
                                   force_fallback=True))
    y_fb = jax.block_until_ready(fb(x, w0, b0, g0, be0))
    ref0 = _ref_stage(x, w0, b0, g0, be0, P)
    max_err_fb = float(jnp.max(jnp.abs(y_fb - ref0)))
    assert jnp.allclose(y_fb, ref0, atol=2e-4, rtol=2e-4), max_err_fb

    print("KERNEL_OK")
</pallas_src>

<mosaic_0001>
module attributes {stable_mosaic.version = 11 : i64} {
  func.func @_stage_kernel_fused(%arg0: i32, %arg1: i32, %arg2: memref<1x8x512xf32, #tpu.memory_space<vmem>>, %arg3: memref<8x216xf32, #tpu.memory_space<vmem>>, %arg4: memref<27x512xf32, #tpu.memory_space<vmem>>, %arg5: memref<8x1xf32, #tpu.memory_space<vmem>>, %arg6: memref<8x1xf32, #tpu.memory_space<vmem>>, %arg7: memref<8x1xf32, #tpu.memory_space<vmem>>, %arg8: memref<1x8x512xf32, #tpu.memory_space<vmem>>, %arg9: memref<216x512xf32, #tpu.memory_space<vmem>>) attributes {dimension_semantics = [#tpu.dimension_semantics<parallel>, #tpu.dimension_semantics<arbitrary>], iteration_bounds = array<i64: 2, 1>, scalar_prefetch = 0 : i64, scratch_operands = 1 : i64, tpu.core_type = #tpu.core_type<tc>, window_params = [{transform_indices = @transform_0, window_bounds = array<i64: 1, 8, 512>}, {transform_indices = @transform_1, window_bounds = array<i64: 8, 216>}, {pipeline_mode = #tpu.pipeline_mode<synchronous>, transform_indices = @transform_2, window_bounds = array<i64: 27, 512>}, {transform_indices = @transform_3, window_bounds = array<i64: 8, 1>}, {transform_indices = @transform_4, window_bounds = array<i64: 8, 1>}, {transform_indices = @transform_5, window_bounds = array<i64: 8, 1>}, {transform_indices = @transform_6, window_bounds = array<i64: 1, 8, 512>}]} {
    %c0_i32 = arith.constant 0 : i32
    %0 = arith.cmpi eq, %arg1, %c0_i32 : i32
    %1 = arith.extui %0 : i1 to i32
    %c0_i32_0 = arith.constant 0 : i32
    %2 = arith.cmpi ne, %1, %c0_i32_0 : i32
    scf.if %2 {
      %c0_20 = arith.constant 0 : index
      %c0_21 = arith.constant 0 : index
      %c0_22 = arith.constant 0 : index
      %39 = vector.load %arg2[%c0_20, %c0_21, %c0_22] : memref<1x8x512xf32, #tpu.memory_space<vmem>>, vector<1x8x512xf32>
      %40 = vector.shape_cast %39 : vector<1x8x512xf32> to vector<8x512xf32>
      %c73_i32 = arith.constant 73 : i32
      %41 = tpu.dynamic_rotate %40 by %c73_i32 dim 1 : vector<8x512xf32>, i32 -> vector<8x512xf32>
      %c0_23 = arith.constant 0 : index
      %c0_24 = arith.constant 0 : index
      %42 = vector.load %arg4[%c0_23, %c0_24] : memref<27x512xf32, #tpu.memory_space<vmem>>, vector<1x512xf32>
      %43 = vector.broadcast %42 : vector<1x512xf32> to vector<8x512xf32>
      %44 = arith.mulf %41, %43 : vector<8x512xf32>
      %c0_25 = arith.constant 0 : index
      %c0_26 = arith.constant 0 : index
      %45 = vector.load %arg9[%c0_25, %c0_26] : memref<216x512xf32, #tpu.memory_space<vmem>>, vector<8x512xf32>
      tpu.vector_store %arg9[%c0_25, %c0_26], %44 {strides = array<i32>} : memref<216x512xf32, #tpu.memory_space<vmem>>, vector<8x512xf32>,
      %c72_i32 = arith.constant 72 : i32
      %46 = tpu.dynamic_rotate %40 by %c72_i32 dim 1 : vector<8x512xf32>, i32 -> vector<8x512xf32>
      %c1 = arith.constant 1 : index
      %c0_27 = arith.constant 0 : index
      %47 = vector.load %arg4[%c1, %c0_27] : memref<27x512xf32, #tpu.memory_space<vmem>>, vector<1x512xf32>
      %48 = vector.broadcast %47 : vector<1x512xf32> to vector<8x512xf32>
      %49 = arith.mulf %46, %48 : vector<8x512xf32>
      %c8 = arith.constant 8 : index
      %c0_28 = arith.constant 0 : index
      %50 = vector.load %arg9[%c8, %c0_28] : memref<216x512xf32, #tpu.memory_space<vmem>>, vector<8x512xf32>
      tpu.vector_store %arg9[%c8, %c0_28], %49 {strides = array<i32>} : memref<216x512xf32, #tpu.memory_space<vmem>>, vector<8x512xf32>,
      %c71_i32 = arith.constant 71 : i32
      %51 = tpu.dynamic_rotate %40 by %c71_i32 dim 1 : vector<8x512xf32>, i32 -> vector<8x512xf32>
      %c2 = arith.constant 2 : index
      %c0_29 = arith.constant 0 : index
      %52 = vector.load %arg4[%c2, %c0_29] : memref<27x512xf32, #tpu.memory_space<vmem>>, vector<1x512xf32>
      %53 = vector.broadcast %52 : vector<1x512xf32> to vector<8x512xf32>
      %54 = arith.mulf %51, %53 : vector<8x512xf32>
      %c16 = arith.constant 16 : index
      %c0_30 = arith.constant 0 : index
      %55 = vector.load %arg9[%c16, %c0_30] : memref<216x512xf32, #tpu.memory_space<vmem>>, vector<8x512xf32>
      tpu.vector_store %arg9[%c16, %c0_30], %54 {strides = array<i32>} : memref<216x512xf32, #tpu.memory_space<vmem>>, vector<8x512xf32>,
      %c65_i32 = arith.constant 65 : i32
      %56 = tpu.dynamic_rotate %40 by %c65_i32 dim 1 : vector<8x512xf32>, i32 -> vector<8x512xf32>
      %c3 = arith.constant 3 : index
      %c0_31 = arith.constant 0 : index
      %57 = vector.load %arg4[%c3, %c0_31] : memref<27x512xf32, #tpu.memory_space<vmem>>, vector<1x512xf32>
      %58 = vector.broadcast %57 : vector<1x512xf32> to vector<8x512xf32>
      %59 = arith.mulf %56, %58 : vector<8x512xf32>
      %c24 = arith.constant 24 : index
      %c0_32 = arith.constant 0 : index
      %60 = vector.load %arg9[%c24, %c0_32] : memref<216x512xf32, #tpu.memory_space<vmem>>, vector<8x512xf32>
      tpu.vector_store %arg9[%c24, %c0_32], %59 {strides = array<i32>} : memref<216x512xf32, #tpu.memory_space<vmem>>, vector<8x512xf32>,
      %c64_i32 = arith.constant 64 : i32
      %61 = tpu.dynamic_rotate %40 by %c64_i32 dim 1 : vector<8x512xf32>, i32 -> vector<8x512xf32>
      %c4 = arith.constant 4 : index
      %c0_33 = arith.constant 0 : index
      %62 = vector.load %arg4[%c4, %c0_33] : memref<27x512xf32, #tpu.memory_space<vmem>>, vector<1x512xf32>
      %63 = vector.broadcast %62 : vector<1x512xf32> to vector<8x512xf32>
      %64 = arith.mulf %61, %63 : vector<8x512xf32>
      %c32 = arith.constant 32 : index
      %c0_34 = arith.constant 0 : index
      %65 = vector.load %arg9[%c32, %c0_34] : memref<216x512xf32, #tpu.memory_space<vmem>>, vector<8x512xf32>
      tpu.vector_store %arg9[%c32, %c0_34], %64 {strides = array<i32>} : memref<216x512xf32, #tpu.memory_space<vmem>>, vector<8x512xf32>,
      %c63_i32 = arith.constant 63 : i32
      %66 = tpu.dynamic_rotate %40 by %c63_i32 dim 1 : vector<8x512xf32>, i32 -> vector<8x512xf32>
      %c5 = arith.constant 5 : index
      %c0_35 = arith.constant 0 : index
      %67 = vector.load %arg4[%c5, %c0_35] : memref<27x512xf32, #tpu.memory_space<vmem>>, vector<1x512xf32>
      %68 = vector.broadcast %67 : vector<1x512xf32> to vector<8x512xf32>
      %69 = arith.mulf %66, %68 : vector<8x512xf32>
      %c40 = arith.constant 40 : index
      %c0_36 = arith.constant 0 : index
      %70 = vector.load %arg9[%c40, %c0_36] : memref<216x512xf32, #tpu.memory_space<vmem>>, vector<8x512xf32>
      tpu.vector_store %arg9[%c40, %c0_36], %69 {strides = array<i32>} : memref<216x512xf32, #tpu.memory_space<vmem>>, vector<8x512xf32>,
      %c57_i32 = arith.constant 57 : i32
      %71 = tpu.dynamic_rotate %40 by %c57_i32 dim 1 : vector<8x512xf32>, i32 -> vector<8x512xf32>
      %c6 = arith.constant 6 : index
      %c0_37 = arith.constant 0 : index
      %72 = vector.load %arg4[%c6, %c0_37] : memref<27x512xf32, #tpu.memory_space<vmem>>, vector<1x512xf32>
      %73 = vector.broadcast %72 : vector<1x512xf32> to vector<8x512xf32>
      %74 = arith.mulf %71, %73 : vector<8x512xf32>
      %c48 = arith.constant 48 : index
      %c0_38 = arith.constant 0 : index
      %75 = vector.load %arg9[%c48, %c0_38] : memref<216x512xf32, #tpu.memory_space<vmem>>, vector<8x512xf32>
      tpu.vector_store %arg9[%c48, %c0_38], %74 {strides = array<i32>} : memref<216x512xf32, #tpu.memory_space<vmem>>, vector<8x512xf32>,
      %c56_i32 = arith.constant 56 : i32
      %76 = tpu.dynamic_rotate %40 by %c56_i32 dim 1 : vector<8x512xf32>, i32 -> vector<8x512xf32>
      %c7 = arith.constant 7 : index
      %c0_39 = arith.constant 0 : index
      %77 = vector.load %arg4[%c7, %c0_39] : memref<27x512xf32, #tpu.memory_space<vmem>>, vector<1x512xf32>
      %78 = vector.broadcast %77 : vector<1x512xf32> to vector<8x512xf32>
      %79 = arith.mulf %76, %78 : vector<8x512xf32>
      %c56 = arith.constant 56 : index
      %c0_40 = arith.constant 0 : index
      %80 = vector.load %arg9[%c56, %c0_40] : memref<216x512xf32, #tpu.memory_space<vmem>>, vector<8x512xf32>
      tpu.vector_store %arg9[%c56, %c0_40], %79 {strides = array<i32>} : memref<216x512xf32, #tpu.memory_space<vmem>>, vector<8x512xf32>,
      %c55_i32 = arith.constant 55 : i32
      %81 = tpu.dynamic_rotate %40 by %c55_i32 dim 1 : vector<8x512xf32>, i32 -> vector<8x512xf32>
      %c8_41 = arith.constant 8 : index
      %c0_42 = arith.constant 0 : index
      %82 = vector.load %arg4[%c8_41, %c0_42] : memref<27x512xf32, #tpu.memory_space<vmem>>, vector<1x512xf32>
      %83 = vector.broadcast %82 : vector<1x512xf32> to vector<8x512xf32>
      %84 = arith.mulf %81, %83 : vector<8x512xf32>
      %c64 = arith.constant 64 : index
      %c0_43 = arith.constant 0 : index
      %85 = vector.load %arg9[%c64, %c0_43] : memref<216x512xf32, #tpu.memory_space<vmem>>, vector<8x512xf32>
      tpu.vector_store %arg9[%c64, %c0_43], %84 {strides = array<i32>} : memref<216x512xf32, #tpu.memory_space<vmem>>, vector<8x512xf32>,
      %c9_i32 = arith.constant 9 : i32
      %86 = tpu.dynamic_rotate %40 by %c9_i32 dim 1 : vector<8x512xf32>, i32 -> vector<8x512xf32>
      %c9 = arith.constant 9 : index
      %c0_44 = arith.constant 0 : index
      %87 = vector.load %arg4[%c9, %c0_44] : memref<27x512xf32, #tpu.memory_space<vmem>>, vector<1x512xf32>
      %88 = vector.broadcast %87 : vector<1x512xf32> to vector<8x512xf32>
      %89 = arith.mulf %86, %88 : vector<8x512xf32>
      %c72 = arith.constant 72 : index
      %c0_45 = arith.constant 0 : index
      %90 = vector.load %arg9[%c72, %c0_45] : memref<216x512xf32, #tpu.memory_space<vmem>>, vector<8x512xf32>
      tpu.vector_store %arg9[%c72, %c0_45], %89 {strides = array<i32>} : memref<216x512xf32, #tpu.memory_space<vmem>>, vector<8x512xf32>,
      %c8_i32 = arith.constant 8 : i32
      %91 = tpu.dynamic_rotate %40 by %c8_i32 dim 1 : vector<8x512xf32>, i32 -> vector<8x512xf32>
      %c10 = arith.constant 10 : index
      %c0_46 = arith.constant 0 : index
      %92 = vector.load %arg4[%c10, %c0_46] : memref<27x512xf32, #tpu.memory_space<vmem>>, vector<1x512xf32>
      %93 = vector.broadcast %92 : vector<1x512xf32> to vector<8x512xf32>
      %94 = arith.mulf %91, %93 : vector<8x512xf32>
      %c80 = arith.constant 80 : index
      %c0_47 = arith.constant 0 : index
      %95 = vector.load %arg9[%c80, %c0_47] : memref<216x512xf32, #tpu.memory_space<vmem>>, vector<8x512xf32>
      tpu.vector_store %arg9[%c80, %c0_47], %94 {strides = array<i32>} : memref<216x512xf32, #tpu.memory_space<vmem>>, vector<8x512xf32>,
      %c7_i32 = arith.constant 7 : i32
      %96 = tpu.dynamic_rotate %40 by %c7_i32 dim 1 : vector<8x512xf32>, i32 -> vector<8x512xf32>
      %c11 = arith.constant 11 : index
      %c0_48 = arith.constant 0 : index
      %97 = vector.load %arg4[%c11, %c0_48] : memref<27x512xf32, #tpu.memory_space<vmem>>, vector<1x512xf32>
      %98 = vector.broadcast %97 : vector<1x512xf32> to vector<8x512xf32>
      %99 = arith.mulf %96, %98 : vector<8x512xf32>
      %c88 = arith.constant 88 : index
      %c0_49 = arith.constant 0 : index
      %100 = vector.load %arg9[%c88, %c0_49] : memref<216x512xf32, #tpu.memory_space<vmem>>, vector<8x512xf32>
      tpu.vector_store %arg9[%c88, %c0_49], %99 {strides = array<i32>} : memref<216x512xf32, #tpu.memory_space<vmem>>, vector<8x512xf32>,
      %c1_i32 = arith.constant 1 : i32
      %101 = tpu.dynamic_rotate %40 by %c1_i32 dim 1 : vector<8x512xf32>, i32 -> vector<8x512xf32>
      %c12 = arith.constant 12 : index
      %c0_50 = arith.constant 0 : index
      %102 = vector.load %arg4[%c12, %c0_50] : memref<27x512xf32, #tpu.memory_space<vmem>>, vector<1x512xf32>
      %103 = vector.broadcast %102 : vector<1x512xf32> to vector<8x512xf32>
      %104 = arith.mulf %101, %103 : vector<8x512xf32>
      %c96 = arith.constant 96 : index
      %c0_51 = arith.constant 0 : index
      %105 = vector.load %arg9[%c96, %c0_51] : memref<216x512xf32, #tpu.memory_space<vmem>>, vector<8x512xf32>
      tpu.vector_store %arg9[%c96, %c0_51], %104 {strides = array<i32>} : memref<216x512xf32, #tpu.memory_space<vmem>>, vector<8x512xf32>,
      %c104 = arith.constant 104 : index
      %c0_52 = arith.constant 0 : index
      %106 = vector.load %arg9[%c104, %c0_52] : memref<216x512xf32, #tpu.memory_space<vmem>>, vector<8x512xf32>
      tpu.vector_store %arg9[%c104, %c0_52], %40 {strides = array<i32>} : memref<216x512xf32, #tpu.memory_space<vmem>>, vector<8x512xf32>,
      %c511_i32 = arith.constant 511 : i32
      %107 = tpu.dynamic_rotate %40 by %c511_i32 dim 1 : vector<8x512xf32>, i32 -> vector<8x512xf32>
      %c14 = arith.constant 14 : index
      %c0_53 = arith.constant 0 : index
      %108 = vector.load %arg4[%c14, %c0_53] : memref<27x512xf32, #tpu.memory_space<vmem>>, vector<1x512xf32>
      %109 = vector.broadcast %108 : vector<1x512xf32> to vector<8x512xf32>
      %110 = arith.mulf %107, %109 : vector<8x512xf32>
      %c112 = arith.constant 112 : index
      %c0_54 = arith.constant 0 : index
      %111 = vector.load %arg9[%c112, %c0_54] : memref<216x512xf32, #tpu.memory_space<vmem>>, vector<8x512xf32>
      tpu.vector_store %arg9[%c112, %c0_54], %110 {strides = array<i32>} : memref<216x512xf32, #tpu.memory_space<vmem>>, vector<8x512xf32>,
      %c505_i32 = arith.constant 505 : i32
      %112 = tpu.dynamic_rotate %40 by %c505_i32 dim 1 : vector<8x512xf32>, i32 -> vector<8x512xf32>
      %c15 = arith.constant 15 : index
      %c0_55 = arith.constant 0 : index
      %113 = vector.load %arg4[%c15, %c0_55] : memref<27x512xf32, #tpu.memory_space<vmem>>, vector<1x512xf32>
      %114 = vector.broadcast %113 : vector<1x512xf32> to vector<8x512xf32>
      %115 = arith.mulf %112, %114 : vector<8x512xf32>
      %c120 = arith.constant 120 : index
      %c0_56 = arith.constant 0 : index
      %116 = vector.load %arg9[%c120, %c0_56] : memref<216x512xf32, #tpu.memory_space<vmem>>, vector<8x512xf32>
      tpu.vector_store %arg9[%c120, %c0_56], %115 {strides = array<i32>} : memref<216x512xf32, #tpu.memory_space<vmem>>, vector<8x512xf32>,
      %c504_i32 = arith.constant 504 : i32
      %117 = tpu.dynamic_rotate %40 by %c504_i32 dim 1 : vector<8x512xf32>, i32 -> vector<8x512xf32>
      %c16_57 = arith.constant 16 : index
      %c0_58 = arith.constant 0 : index
      %118 = vector.load %arg4[%c16_57, %c0_58] : memref<27x512xf32, #tpu.memory_space<vmem>>, vector<1x512xf32>
      %119 = vector.broadcast %118 : vector<1x512xf32> to vector<8x512xf32>
      %120 = arith.mulf %117, %119 : vector<8x512xf32>
      %c128 = arith.constant 128 : index
      %c0_59 = arith.constant 0 : index
      %121 = vector.load %arg9[%c128, %c0_59] : memref<216x512xf32, #tpu.memory_space<vmem>>, vector<8x512xf32>
      tpu.vector_store %arg9[%c128, %c0_59], %120 {strides = array<i32>} : memref<216x512xf32, #tpu.memory_space<vmem>>, vector<8x512xf32>,
      %c503_i32 = arith.constant 503 : i32
      %122 = tpu.dynamic_rotate %40 by %c503_i32 dim 1 : vector<8x512xf32>, i32 -> vector<8x512xf32>
      %c17 = arith.constant 17 : index
      %c0_60 = arith.constant 0 : index
      %123 = vector.load %arg4[%c17, %c0_60] : memref<27x512xf32, #tpu.memory_space<vmem>>, vector<1x512xf32>
      %124 = vector.broadcast %123 : vector<1x512xf32> to vector<8x512xf32>
      %125 = arith.mulf %122, %124 : vector<8x512xf32>
      %c136 = arith.constant 136 : index
      %c0_61 = arith.constant 0 : index
      %126 = vector.load %arg9[%c136, %c0_61] : memref<216x512xf32, #tpu.memory_space<vmem>>, vector<8x512xf32>
      tpu.vector_store %arg9[%c136, %c0_61], %125 {strides = array<i32>} : memref<216x512xf32, #tpu.memory_space<vmem>>, vector<8x512xf32>,
      %c457_i32 = arith.constant 457 : i32
      %127 = tpu.dynamic_rotate %40 by %c457_i32 dim 1 : vector<8x512xf32>, i32 -> vector<8x512xf32>
      %c18 = arith.constant 18 : index
      %c0_62 = arith.constant 0 : index
      %128 = vector.load %arg4[%c18, %c0_62] : memref<27x512xf32, #tpu.memory_space<vmem>>, vector<1x512xf32>
      %129 = vector.broadcast %128 : vector<1x512xf32> to vector<8x512xf32>
      %130 = arith.mulf %127, %129 : vector<8x512xf32>
      %c144 = arith.constant 144 : index
      %c0_63 = arith.constant 0 : index
      %131 = vector.load %arg9[%c144, %c0_63] : memref<216x512xf32, #tpu.memory_space<vmem>>, vector<8x512xf32>
      tpu.vector_store %arg9[%c144, %c0_63], %130 {strides = array<i32>} : memref<216x512xf32, #tpu.memory_space<vmem>>, vector<8x512xf32>,
      %c456_i32 = arith.constant 456 : i32
      %132 = tpu.dynamic_rotate %40 by %c456_i32 dim 1 : vector<8x512xf32>, i32 -> vector<8x512xf32>
      %c19 = arith.constant 19 : index
      %c0_64 = arith.constant 0 : index
      %133 = vector.load %arg4[%c19, %c0_64] : memref<27x512xf32, #tpu.memory_space<vmem>>, vector<1x512xf32>
      %134 = vector.broadcast %133 : vector<1x512xf32> to vector<8x512xf32>
      %135 = arith.mulf %132, %134 : vector<8x512xf32>
      %c152 = arith.constant 152 : index
      %c0_65 = arith.constant 0 : index
      %136 = vector.load %arg9[%c152, %c0_65] : memref<216x512xf32, #tpu.memory_space<vmem>>, vector<8x512xf32>
      tpu.vector_store %arg9[%c152, %c0_65], %135 {strides = array<i32>} : memref<216x512xf32, #tpu.memory_space<vmem>>, vector<8x512xf32>,
      %c455_i32 = arith.constant 455 : i32
      %137 = tpu.dynamic_rotate %40 by %c455_i32 dim 1 : vector<8x512xf32>, i32 -> vector<8x512xf32>
      %c20 = arith.constant 20 : index
      %c0_66 = arith.constant 0 : index
      %138 = vector.load %arg4[%c20, %c0_66] : memref<27x512xf32, #tpu.memory_space<vmem>>, vector<1x512xf32>
      %139 = vector.broadcast %138 : vector<1x512xf32> to vector<8x512xf32>
      %140 = arith.mulf %137, %139 : vector<8x512xf32>
      %c160 = arith.constant 160 : index
      %c0_67 = arith.constant 0 : index
      %141 = vector.load %arg9[%c160, %c0_67] : memref<216x512xf32, #tpu.memory_space<vmem>>, vector<8x512xf32>
      tpu.vector_store %arg9[%c160, %c0_67], %140 {strides = array<i32>} : memref<216x512xf32, #tpu.memory_space<vmem>>, vector<8x512xf32>,
      %c449_i32 = arith.constant 449 : i32
      %142 = tpu.dynamic_rotate %40 by %c449_i32 dim 1 : vector<8x512xf32>, i32 -> vector<8x512xf32>
      %c21 = arith.constant 21 : index
      %c0_68 = arith.constant 0 : index
      %143 = vector.load %arg4[%c21, %c0_68] : memref<27x512xf32, #tpu.memory_space<vmem>>, vector<1x512xf32>
      %144 = vector.broadcast %143 : vector<1x512xf32> to vector<8x512xf32>
      %145 = arith.mulf %142, %144 : vector<8x512xf32>
      %c168 = arith.constant 168 : index
      %c0_69 = arith.constant 0 : index
      %146 = vector.load %arg9[%c168, %c0_69] : memref<216x512xf32, #tpu.memory_space<vmem>>, vector<8x512xf32>
      tpu.vector_store %arg9[%c168, %c0_69], %145 {strides = array<i32>} : memref<216x512xf32, #tpu.memory_space<vmem>>, vector<8x512xf32>,
      %c448_i32 = arith.constant 448 : i32
      %147 = tpu.dynamic_rotate %40 by %c448_i32 dim 1 : vector<8x512xf32>, i32 -> vector<8x512xf32>
      %c22 = arith.constant 22 : index
      %c0_70 = arith.constant 0 : index
      %148 = vector.load %arg4[%c22, %c0_70] : memref<27x512xf32, #tpu.memory_space<vmem>>, vector<1x512xf32>
      %149 = vector.broadcast %148 : vector<1x512xf32> to vector<8x512xf32>
      %150 = arith.mulf %147, %149 : vector<8x512xf32>
      %c176 = arith.constant 176 : index
      %c0_71 = arith.constant 0 : index
      %151 = vector.load %arg9[%c176, %c0_71] : memref<216x512xf32, #tpu.memory_space<vmem>>, vector<8x512xf32>
      tpu.vector_store %arg9[%c176, %c0_71], %150 {strides = array<i32>} : memref<216x512xf32, #tpu.memory_space<vmem>>, vector<8x512xf32>,
      %c447_i32 = arith.constant 447 : i32
      %152 = tpu.dynamic_rotate %40 by %c447_i32 dim 1 : vector<8x512xf32>, i32 -> vector<8x512xf32>
      %c23 = arith.constant 23 : index
      %c0_72 = arith.constant 0 : index
      %153 = vector.load %arg4[%c23, %c0_72] : memref<27x512xf32, #tpu.memory_space<vmem>>, vector<1x512xf32>
      %154 = vector.broadcast %153 : vector<1x512xf32> to vector<8x512xf32>
      %155 = arith.mulf %152, %154 : vector<8x512xf32>
      %c184 = arith.constant 184 : index
      %c0_73 = arith.constant 0 : index
      %156 = vector.load %arg9[%c184, %c0_73] : memref<216x512xf32, #tpu.memory_space<vmem>>, vector<8x512xf32>
      tpu.vector_store %arg9[%c184, %c0_73], %155 {strides = array<i32>} : memref<216x512xf32, #tpu.memory_space<vmem>>, vector<8x512xf32>,
      %c441_i32 = arith.constant 441 : i32
      %157 = tpu.dynamic_rotate %40 by %c441_i32 dim 1 : vector<8x512xf32>, i32 -> vector<8x512xf32>
      %c24_74 = arith.constant 24 : index
      %c0_75 = arith.constant 0 : index
      %158 = vector.load %arg4[%c24_74, %c0_75] : memref<27x512xf32, #tpu.memory_space<vmem>>, vector<1x512xf32>
      %159 = vector.broadcast %158 : vector<1x512xf32> to vector<8x512xf32>
      %160 = arith.mulf %157, %159 : vector<8x512xf32>
      %c192 = arith.constant 192 : index
      %c0_76 = arith.constant 0 : index
      %161 = vector.load %arg9[%c192, %c0_76] : memref<216x512xf32, #tpu.memory_space<vmem>>, vector<8x512xf32>
      tpu.vector_store %arg9[%c192, %c0_76], %160 {strides = array<i32>} : memref<216x512xf32, #tpu.memory_space<vmem>>, vector<8x512xf32>,
      %c440_i32 = arith.constant 440 : i32
      %162 = tpu.dynamic_rotate %40 by %c440_i32 dim 1 : vector<8x512xf32>, i32 -> vector<8x512xf32>
      %c25 = arith.constant 25 : index
      %c0_77 = arith.constant 0 : index
      %163 = vector.load %arg4[%c25, %c0_77] : memref<27x512xf32, #tpu.memory_space<vmem>>, vector<1x512xf32>
      %164 = vector.broadcast %163 : vector<1x512xf32> to vector<8x512xf32>
      %165 = arith.mulf %162, %164 : vector<8x512xf32>
      %c200 = arith.constant 200 : index
      %c0_78 = arith.constant 0 : index
      %166 = vector.load %arg9[%c200, %c0_78] : memref<216x512xf32, #tpu.memory_space<vmem>>, vector<8x512xf32>
      tpu.vector_store %arg9[%c200, %c0_78], %165 {strides = array<i32>} : memref<216x512xf32, #tpu.memory_space<vmem>>, vector<8x512xf32>,
      %c439_i32 = arith.constant 439 : i32
      %167 = tpu.dynamic_rotate %40 by %c439_i32 dim 1 : vector<8x512xf32>, i32 -> vector<8x512xf32>
      %c26 = arith.constant 26 : index
      %c0_79 = arith.constant 0 : index
      %168 = vector.load %arg4[%c26, %c0_79] : memref<27x512xf32, #tpu.memory_space<vmem>>, vector<1x512xf32>
      %169 = vector.broadcast %168 : vector<1x512xf32> to vector<8x512xf32>
      %170 = arith.mulf %167, %169 : vector<8x512xf32>
      %c208 = arith.constant 208 : index
      %c0_80 = arith.constant 0 : index
      %171 = vector.load %arg9[%c208, %c0_80] : memref<216x512xf32, #tpu.memory_space<vmem>>, vector<8x512xf32>
      tpu.vector_store %arg9[%c208, %c0_80], %170 {strides = array<i32>} : memref<216x512xf32, #tpu.memory_space<vmem>>, vector<8x512xf32>,
    } else {
    }
    %c0 = arith.constant 0 : index
    %c0_1 = arith.constant 0 : index
    %3 = vector.load %arg3[%c0, %c0_1] : memref<8x216xf32, #tpu.memory_space<vmem>>, vector<8x216xf32>
    %c0_2 = arith.constant 0 : index
    %c0_3 = arith.constant 0 : index
    %4 = vector.load %arg9[%c0_2, %c0_3] : memref<216x512xf32, #tpu.memory_space<vmem>>, vector<216x512xf32>
    %cst = arith.constant dense<0.000000e+00> : vector<8x512xf32>
    %5 = tpu.matmul %3, %4, %cst {dimension_numbers = #tpu.dot_dimension_numbers<[1], [0], [0], [1], [0, 0, 1, 1], [], []>} : vector<8x216xf32>, vector<216x512xf32>, vector<8x512xf32> -> vector<8x512xf32>
    %c0_4 = arith.constant 0 : index
    %c0_5 = arith.constant 0 : index
    %6 = vector.load %arg5[%c0_4, %c0_5] : memref<8x1xf32, #tpu.memory_space<vmem>>, vector<8x1xf32>
    %7 = vector.broadcast %6 : vector<8x1xf32> to vector<8x512xf32>
    %8 = arith.addf %5, %7 : vector<8x512xf32>
    %cst_6 = arith.constant dense<0.000000e+00> : vector<8xf32>
    %9 = vector.multi_reduction <add>, %8, %cst_6 [1] : vector<8x512xf32> to vector<8xf32>
    %10 = vector.shape_cast %9 : vector<8xf32> to vector<8x1xf32>
    %cst_7 = arith.constant 5.120000e+02 : f32
    %11 = vector.broadcast %cst_7 : f32 to vector<8x1xf32>
    %12 = arith.divf %10, %11 : vector<8x1xf32>
    %13 = vector.broadcast %12 : vector<8x1xf32> to vector<8x512xf32>
    %14 = arith.subf %8, %13 : vector<8x512xf32>
    %15 = arith.mulf %14, %14 : vector<8x512xf32>
    %cst_8 = arith.constant dense<0.000000e+00> : vector<8xf32>
    %16 = vector.multi_reduction <add>, %15, %cst_8 [1] : vector<8x512xf32> to vector<8xf32>
    %17 = vector.shape_cast %16 : vector<8xf32> to vector<8x1xf32>
    %cst_9 = arith.constant 5.120000e+02 : f32
    %18 = vector.broadcast %cst_9 : f32 to vector<8x1xf32>
    %19 = arith.divf %17, %18 : vector<8x1xf32>
    %cst_10 = arith.constant 9.99999974E-6 : f32
    %20 = vector.broadcast %cst_10 : f32 to vector<8x1xf32>
    %21 = arith.addf %19, %20 : vector<8x1xf32>
    %22 = math.rsqrt %21 : vector<8x1xf32>
    %23 = vector.broadcast %22 : vector<8x1xf32> to vector<8x512xf32>
    %24 = arith.mulf %14, %23 : vector<8x512xf32>
    %c0_11 = arith.constant 0 : index
    %c0_12 = arith.constant 0 : index
    %25 = vector.load %arg6[%c0_11, %c0_12] : memref<8x1xf32, #tpu.memory_space<vmem>>, vector<8x1xf32>
    %26 = vector.broadcast %25 : vector<8x1xf32> to vector<8x512xf32>
    %27 = arith.mulf %24, %26 : vector<8x512xf32>
    %c0_13 = arith.constant 0 : index
    %c0_14 = arith.constant 0 : index
    %28 = vector.load %arg7[%c0_13, %c0_14] : memref<8x1xf32, #tpu.memory_space<vmem>>, vector<8x1xf32>
    %29 = vector.broadcast %28 : vector<8x1xf32> to vector<8x512xf32>
    %30 = arith.addf %27, %29 : vector<8x512xf32>
    %cst_15 = arith.constant 0.000000e+00 : f32
    %31 = vector.broadcast %cst_15 : f32 to vector<8x512xf32>
    %32 = arith.cmpf oge, %30, %31 : vector<8x512xf32>
    %cst_16 = arith.constant 0.00999999977 : f32
    %33 = vector.broadcast %cst_16 : f32 to vector<8x512xf32>
    %34 = arith.mulf %33, %30 : vector<8x512xf32>
    %35 = arith.select %32, %30, %34 : vector<8x512xi1>, vector<8x512xf32>
    %c0_17 = arith.constant 0 : index
    %c0_18 = arith.constant 0 : index
    %c0_19 = arith.constant 0 : index
    %36 = vector.load %arg8[%c0_17, %c0_18, %c0_19] : memref<1x8x512xf32, #tpu.memory_space<vmem>>, vector<1x8x512xf32>
    %37 = vector.shape_cast %36 : vector<1x8x512xf32> to vector<8x512xf32>
    %38 = vector.shape_cast %35 : vector<8x512xf32> to vector<1x8x512xf32>
    tpu.vector_store %arg8[%c0_17, %c0_18, %c0_19], %38 {strides = array<i32>} : memref<1x8x512xf32, #tpu.memory_space<vmem>>, vector<1x8x512xf32>,
    return
  }
  func.func @transform_0(%arg0: i32, %arg1: i32) -> (i32, i32, i32) {
    %c0_i32 = arith.constant 0 : i32
    %c0_i32_0 = arith.constant 0 : i32
    %c0_i32_1 = arith.constant 0 : i32
    return %arg0, %c0_i32, %c0_i32_0 : i32, i32, i32
  }
  func.func @transform_1(%arg0: i32, %arg1: i32) -> (i32, i32) {
    %c0_i32 = arith.constant 0 : i32
    %c0_i32_0 = arith.constant 0 : i32
    return %arg1, %c0_i32 : i32, i32
  }
  func.func @transform_2(%arg0: i32, %arg1: i32) -> (i32, i32) {
    %c0_i32 = arith.constant 0 : i32
    %c0_i32_0 = arith.constant 0 : i32
    %c0_i32_1 = arith.constant 0 : i32
    return %c0_i32, %c0_i32_0 : i32, i32
  }
  func.func @transform_3(%arg0: i32, %arg1: i32) -> (i32, i32) {
    %c0_i32 = arith.constant 0 : i32
    %c0_i32_0 = arith.constant 0 : i32
    return %arg1, %c0_i32 : i32, i32
  }
  func.func @transform_4(%arg0: i32, %arg1: i32) -> (i32, i32) {
    %c0_i32 = arith.constant 0 : i32
    %c0_i32_0 = arith.constant 0 : i32
    return %arg1, %c0_i32 : i32, i32
  }
  func.func @transform_5(%arg0: i32, %arg1: i32) -> (i32, i32) {
    %c0_i32 = arith.constant 0 : i32
    %c0_i32_0 = arith.constant 0 : i32
    return %arg1, %c0_i32 : i32, i32
  }
  func.func @transform_6(%arg0: i32, %arg1: i32) -> (i32, i32, i32) {
    %c0_i32 = arith.constant 0 : i32
    %c0_i32_0 = arith.constant 0 : i32
    return %arg0, %arg1, %c0_i32 : i32, i32, i32
  }
}

</mosaic_0001>

<bundles_post_ra>
// kernel: cov_dropout_norm_nonlin.2
= control target key start
LH: loop header
LB: loop body
LE: loop exit
PB: predicated region body
PF: predicated region fallthrough
CT: control target
= control target key end

     0   :  { %s2125_s21 = smov 0   ;;  %s2127_s22 = smov 0   ;;  %s2857_s0 = inlined_call_operand.vmem [shape: f32[2,8,512], index: 0, kind: input, shape index: {}]   ;;  %s2858_s1 = inlined_call_operand.vmem [shape: f32[8,216], index: 1, kind: input, shape index: {}]   ;;  %s2859_s2 = inlined_call_operand.vmem [shape: f32[27,512], index: 2, kind: input, shape index: {}]   ;;  %s2860_s3 = inlined_call_operand.vmem [shape: f32[8,1], index: 3, kind: input, shape index: {}]   ;;  %s2861_s4 = inlined_call_operand.vmem [shape: f32[8,1], index: 4, kind: input, shape index: {}]   ;;  %s2862_s5 = inlined_call_operand.vmem [shape: f32[8,1], index: 5, kind: input, shape index: {}]   ;;  %s2863_s6 = inlined_call_operand.vmem [shape: f32[2,8,512], index: 6, kind: output, shape index: {}]  }
   0x1   :  { %s2129_s23 = smov 0  }
   0x2 LB: > { %s28_s24 = sadd.s32 1, %s2066_s22  ;;  %p1862_p0 = scmp.ge.s32.totalorder %s2070_s23, 1  ;;  %s2070_s23 = sphi %s2129_s23, %s16_s23   ;;  %s2066_s22 = sphi %s2127_s22, %s2902_s22   ;;  %s2062_s21 = sphi %s2125_s21, %s2901_s21  }
   0x3   : > { %p30_p1 = scmp.ge.s32.totalorder %s28_s24, 2  ;;  %p263_p2 = scmp.lt.s32.totalorder %s2070_s23, 3 }
   0x5   : > { %s2904_s24 = smov (%p30_p1, %s28_s24), 0  ;;  %p264_p3 = pnand %p1862_p0, %p263_p2 }
   0x7   : > { %267 = sbr.rel (%p264_p3) target bundleno = 836 (0x344), region = 44 }
   0xe   : > { %p314_p4 = scmp.lt.s32.totalorder %s2062_s21, 1  ;;  %s2072_s29 = smov 72   ;;  %v361_v4 = vlaneseq  ;;  %v2224_v8 = vld [vmem:[%s2859_s2 + $0x43] ss:$8 sm:$0xf]  ;;  %vm1501_vm4 = vcmask 719872  }
   0xf   : > { %s2073_s30 = smov 73   ;;  %s2074_s7 = smov 71   ;;  %v2231_v10 = vld [vmem:[%s2859_s2 + $0x42] ss:$8 sm:$0xf] }
  0x10   : > { %s2906_s21 = smov (!%p314_p4, %s2062_s21), 1  ;;  %s2075_s8 = smov 65   ;;  %v371_v5 = vshrl.u32 %v361_v4, 7  ;;  %v2215_v6 = vand.u32 127, %v361_v4 }
  0x11   : > { %s1896_s25 = sshll.u32 %s2906_s21, 5  ;;  %s2076_s9 = smov 64   ;;  %v2236_v11 = vld [vmem:[%s2859_s2] ss:$8 sm:$0xf] }
  0x12   : > { %s318_s28 = scalar_lea.vmem %s2857_s0, %s1896_s25  ;;  %s2077_s10 = smov 63   ;;  %v2219_v7 = vsub.s32 0, %v371_v5  ;;  %v2226_v9 = vsub.s32 1, %v371_v5  ;;  %v2238_v14 = vsub.s32 3, %v371_v5  ;;  %vm406_vm0 = vcmp.lt.s32.totalorder %v2215_v6, 72 }
  0x13   : > { %v2151_v0 = vld [vmem:[%s318_s28] sm:$0xff]  ;;  %v2155_v1 = vld [vmem:[%s318_s28 + $0x8] sm:$0xff]  ;;  %v2159_v2 = vld [vmem:[%s318_s28 + $0x18] sm:$0xff]  ;;  %s2078_s11 = smov 57   ;;  %s2079_s12 = smov 56   ;;  %vm363_vm1 = vcmp.lt.s32.totalorder %v2215_v6, 73 }
  0x14   : > { %398 = vrot.lane.b32.xlu1 %v2151_v0, %s2072_s29  ;;  %353 = vrot.lane.b32.xlu0 %v2151_v0, %s2073_s30  ;;  %v2163_v3 = vld [vmem:[%s318_s28 + $0x10] sm:$0xff]  ;;  %s2080_s13 = smov 55   ;;  %s2081_s14 = smov 9   ;;  %v1143_v16 = vrot.slane %v2224_v8, %v2219_v7  ;;  %v1112_v17 = vrot.slane %v2231_v10, %v2219_v7  ;;  %v377_v18 = vrot.slane %v2236_v11, %v2226_v9  ;;  %v2261_v24 = vsub.s32 2, %v371_v5 }
  0x15   : > { %s2082_s15 = smov 8   ;;  %s2083_s16 = smov 7   ;;  %v2243_v15 = vld [vmem:[%s2859_s2 + $0x1] ss:$8 sm:$0xf]  ;;  %v1155_v23 = vrot.slane %v2224_v8, %v2238_v14  ;;  %v373_v27 = vrot.slane %v2236_v11, %v2219_v7  ;;  %v1124_v28 = vrot.slane %v2231_v10, %v2238_v14  ;;  %v1147_v36 = vrot.slane %v2224_v8, %v2226_v9 }
  0x16   : > { %s2084_s17 = smov 1   ;;  %s2085_s18 = smov 127   ;;  %v421_v19 = vrot.slane %v2243_v15, %v2226_v9  ;;  %v417_v22 = vrot.slane %v2243_v15, %v2219_v7  ;;  %v425_v35 = vrot.slane %v2243_v15, %v2261_v24  ;;  %v1151_v37 = vrot.slane %v2224_v8, %v2261_v24  ;;  %v2322_v59 = vld [vmem:[%s2859_s2 + $0x2] ss:$8 sm:$0xf] }
  0x17   : > { %s2086_s19 = smov 121   ;;  %v381_v42 = vrot.slane %v2236_v11, %v2261_v24  ;;  %v1116_v47 = vrot.slane %v2231_v10, %v2226_v9  ;;  %v1120_v48 = vrot.slane %v2231_v10, %v2261_v24  ;;  %v385_v49 = vrot.slane %v2236_v11, %v2238_v14  ;;  %v2333_v4 = vld [vmem:[%s2859_s2 + $0x44] ss:$8 sm:$0xf] }
  0x18   : > { %400 = vrot.lane.b32.xlu1 %v2155_v1, %s2072_s29  ;;  %355 = vrot.lane.b32.xlu0 %v2155_v1, %s2073_s30  ;;  %v429_v53 = vrot.slane %v2243_v15, %v2238_v14  ;;  %v2344_v11 = vld [vmem:[%s2859_s2 + $0x3] ss:$8 sm:$0xf]  ;;  %vm450_vm2 = vcmp.lt.s32.totalorder %v2215_v6, 71  ;;  %v465_v15 = vrot.slane %v2322_v59, %v2226_v9  ;;  %vm494_vm3 = vcmp.lt.s32.totalorder %v2215_v6, 65 }
  0x19   : > { %vm538_vm5 = vcmp.lt.s32.totalorder %v2215_v6, 64  ;;  %vm582_vm6 = vcmp.lt.s32.totalorder %v2215_v6, 63  ;;  %vm626_vm7 = vcmp.lt.s32.totalorder %v2215_v6, 57  ;;  %vm670_vm8 = vcmp.lt.s32.totalorder %v2215_v6, 56 }
  0x1a   : > { %vm714_vm9 = vcmp.lt.s32.totalorder %v2215_v6, 55  ;;  %vm758_vm10 = vcmp.lt.s32.totalorder %v2215_v6, 9  ;;  %vm802_vm11 = vcmp.lt.s32.totalorder %v2215_v6, 8  ;;  %vm846_vm12 = vcmp.lt.s32.totalorder %v2215_v6, 7 }
  0x1b   : > { %vm890_vm13 = vcmp.lt.s32.totalorder %v2215_v6, 1  ;;  %vm938_vm14 = vcmp.lt.s32.totalorder %v2215_v6, 127  ;;  %vm982_vm15 = vcmp.lt.s32.totalorder %v2215_v6, 121 }
  0x1c   : > { %404 = vrot.lane.b32.xlu1 %v2159_v2, %s2072_s29  ;;  %359 = vrot.lane.b32.xlu0 %v2159_v2, %s2073_s30 }
  0x20   : > { %402 = vrot.lane.b32.xlu1 %v2163_v3, %s2072_s29  ;;  %357 = vrot.lane.b32.xlu0 %v2163_v3, %s2073_s30 }
  0x24   : > { %444 = vrot.lane.b32.xlu1 %v2155_v1, %s2074_s7  ;;  %442 = vrot.lane.b32.xlu0 %v2151_v0, %s2074_s7 }
  0x28   : > { %488 = vrot.lane.b32.xlu1 %v2155_v1, %s2075_s8  ;;  %486 = vrot.lane.b32.xlu0 %v2151_v0, %s2075_s8 }
  0x2c   : > { %492 = vrot.lane.b32.xlu1 %v2159_v2, %s2075_s8  ;;  %448 = vrot.lane.b32.xlu0 %v2159_v2, %s2074_s7 }
  0x30   : > { %490 = vrot.lane.b32.xlu1 %v2163_v3, %s2075_s8  ;;  %446 = vrot.lane.b32.xlu0 %v2163_v3, %s2074_s7 }
  0x34   : > { %532 = vrot.lane.b32.xlu1 %v2155_v1, %s2076_s9  ;;  %530 = vrot.lane.b32.xlu0 %v2151_v0, %s2076_s9 }
  0x38   : > { %576 = vrot.lane.b32.xlu1 %v2155_v1, %s2077_s10  ;;  %574 = vrot.lane.b32.xlu0 %v2151_v0, %s2077_s10 }
  0x3c   : > { %580 = vrot.lane.b32.xlu1 %v2159_v2, %s2077_s10  ;;  %536 = vrot.lane.b32.xlu0 %v2159_v2, %s2076_s9 }
  0x40   : > { %578 = vrot.lane.b32.xlu1 %v2163_v3, %s2077_s10  ;;  %534 = vrot.lane.b32.xlu0 %v2163_v3, %s2076_s9  ;;  %s2087_s9 = smov 120   ;;  %s2088_s10 = smov 119  }
  0x44   : > { %620 = vrot.lane.b32.xlu1 %v2155_v1, %s2078_s11  ;;  %618 = vrot.lane.b32.xlu0 %v2151_v0, %s2078_s11 }
  0x48   : > { %664 = vrot.lane.b32.xlu1 %v2155_v1, %s2079_s12  ;;  %662 = vrot.lane.b32.xlu0 %v2151_v0, %s2079_s12 }
  0x4c   : > { %668 = vrot.lane.b32.xlu1 %v2159_v2, %s2079_s12  ;;  %624 = vrot.lane.b32.xlu0 %v2159_v2, %s2078_s11 }
  0x50   : > { %666 = vrot.lane.b32.xlu1 %v2163_v3, %s2079_s12  ;;  %622 = vrot.lane.b32.xlu0 %v2163_v3, %s2078_s11 }
  0x54   : > { %708 = vrot.lane.b32.xlu1 %v2155_v1, %s2080_s13  ;;  %706 = vrot.lane.b32.xlu0 %v2151_v0, %s2080_s13 }
  0x58   : > { %752 = vrot.lane.b32.xlu1 %v2155_v1, %s2081_s14  ;;  %750 = vrot.lane.b32.xlu0 %v2151_v0, %s2081_s14 }
  0x5c   : > { %756 = vrot.lane.b32.xlu1 %v2159_v2, %s2081_s14  ;;  %712 = vrot.lane.b32.xlu0 %v2159_v2, %s2080_s13 }
  0x60   : > { %754 = vrot.lane.b32.xlu1 %v2163_v3, %s2081_s14  ;;  %710 = vrot.lane.b32.xlu0 %v2163_v3, %s2080_s13 }
  0x64   : > { %796 = vrot.lane.b32.xlu1 %v2155_v1, %s2082_s15  ;;  %794 = vrot.lane.b32.xlu0 %v2151_v0, %s2082_s15 }
  0x68   : > { %840 = vrot.lane.b32.xlu1 %v2155_v1, %s2083_s16  ;;  %838 = vrot.lane.b32.xlu0 %v2151_v0, %s2083_s16 }
  0x6c   : > { %844 = vrot.lane.b32.xlu1 %v2159_v2, %s2083_s16  ;;  %800 = vrot.lane.b32.xlu0 %v2159_v2, %s2082_s15 }
  0x70   : > { %842 = vrot.lane.b32.xlu1 %v2163_v3, %s2083_s16  ;;  %798 = vrot.lane.b32.xlu0 %v2163_v3, %s2082_s15 }
  0x74   : > { %884 = vrot.lane.b32.xlu1 %v2155_v1, %s2084_s17  ;;  %882 = vrot.lane.b32.xlu0 %v2151_v0, %s2084_s17 }
  0x78   : > { %886 = vrot.lane.b32.xlu1 %v2163_v3, %s2084_s17  ;;  %888 = vrot.lane.b32.xlu0 %v2159_v2, %s2084_s17 }
  0x7c   : > { %934 = vrot.lane.b32.xlu1 %v2163_v3, %s2085_s18  ;;  %932 = vrot.lane.b32.xlu0 %v2155_v1, %s2085_s18 }
  0x80   : > { %978 = vrot.lane.b32.xlu1 %v2163_v3, %s2086_s19  ;;  %976 = vrot.lane.b32.xlu0 %v2155_v1, %s2086_s19 }
  0x84   : > { %974 = vrot.lane.b32.xlu1 %v2151_v0, %s2086_s19  ;;  %930 = vrot.lane.b32.xlu0 %v2151_v0, %s2085_s18 }
  0x86   : > { %v399_v12 = vpop.permute.xlu1 %398  ;;  %v354_v13 = vpop.permute.xlu0 %353 }
  0x88   : > { %980 = vrot.lane.b32.xlu1 %v2159_v2, %s2086_s19  ;;  %936 = vrot.lane.b32.xlu0 %v2159_v2, %s2085_s18 }
  0x8a   : > { %v401_v20 = vpop.permute.xlu1 %400  ;;  %v356_v21 = vpop.permute.xlu0 %355 }
  0x8b   : > { %v409_v25 = vsel %vm406_vm0, %v399_v12, %v401_v20  ;;  %v366_v26 = vsel %vm363_vm1, %v354_v13, %v356_v21 }
  0x8c   : > { %v2271_v29 = vmul.f32 %v1143_v16, %v409_v25  ;;  %v2273_v30 = vmul.f32 %v1112_v17, %v366_v26  ;;  %1022 = vrot.lane.b32.xlu1 %v2163_v3, %s2087_s9  ;;  %1020 = vrot.lane.b32.xlu0 %v2155_v1, %s2087_s9  ;;  %v391_v31 = vmul.f32 %v377_v18, %v366_v26 }
  0x8d   : > { %v435_v32 = vmul.f32 %v421_v19, %v409_v25  ;;  %v1174_v18 = vrot.slane %v2333_v4, %v2219_v7 }
  0x8e   : > { %v405_v33 = vpop.permute.xlu1 %404  ;;  %v360_v34 = vpop.permute.xlu0 %359 }
  0x8f   : > { %v410_v39 = vsel %vm406_vm0, %v405_v33, %v399_v12  ;;  %v367_v40 = vsel %vm363_vm1, %v360_v34, %v354_v13  ;;  %v1898_v41 = vpack.c.bf16 %v435_v32, %v391_v31  ;;  %v2349_v12 = vld [vmem:[%s2859_s2 + $0x45] ss:$8 sm:$0xf]  ;;  %v505_v31 = vrot.slane %v2344_v11, %v2219_v7 }
  0x90   : > { %v434_v43 = vmul.f32 %v417_v22, %v410_v39  ;;  %v2293_v44 = vmul.f32 %v1155_v23, %v410_v39  ;;  %v390_v45 = vmul.f32 %v373_v27, %v367_v40  ;;  %v2295_v46 = vmul.f32 %v1124_v28, %v367_v40  ;;  %1066 = vrot.lane.b32.xlu1 %v2163_v3, %s2088_s10 }
  0x91   : > { %1064 = vrot.lane.b32.xlu0 %v2155_v1, %s2088_s10  ;;  %1899 = vmatprep.subr.bf16.mxu0 %v1898_v41  ;;  %v509_v23 = vrot.slane %v2344_v11, %v2226_v9  ;;  %v1205_v25 = vrot.slane %v2349_v12, %v2219_v7  ;;  %v513_v41 = vrot.slane %v2344_v11, %v2261_v24 }
  0x92   : > { %v403_v50 = vpop.permute.xlu1 %402  ;;  %v358_v51 = vpop.permute.xlu0 %357  ;;  %v1900_v52 = vpack.c.bf16 %v434_v43, %v390_v45 }
  0x93   : > { %v407_v55 = vsel %vm406_vm0, %v403_v50, %v405_v33  ;;  %v408_v56 = vsel %vm406_vm0, %v401_v20, %v403_v50  ;;  %v364_v57 = vsel %vm363_vm1, %v358_v51, %v360_v34  ;;  %v365_v58 = vsel %vm363_vm1, %v356_v21, %v358_v51 }
  0x94   : > { %v436_v60 = vmul.f32 %v425_v35, %v408_v56  ;;  %v2324_v61 = vmul.f32 %v1147_v36, %v408_v56  ;;  %v2326_v62 = vmul.f32 %v1151_v37, %v407_v55  ;;  %v392_v63 = vmul.f32 %v381_v42, %v365_v58  ;;  %1062 = vrot.lane.b32.xlu1 %v2151_v0, %s2088_s10 }
  0x95   : > { %v2335_v5 = vmul.f32 %v1116_v47, %v365_v58  ;;  %v2337_v8 = vmul.f32 %v1120_v48, %v364_v57  ;;  %1018 = vrot.lane.b32.xlu0 %v2151_v0, %s2087_s9  ;;  %1901 = vmatpush1.bf16.msra.mxu0 %v1900_v52  ;;  %v393_v10 = vmul.f32 %v385_v49, %v364_v57  ;;  %vm1026_vm0 = vcmp.lt.s32.totalorder %v2215_v6, 120 }
  0x96   : > { %v445_v13 = vpop.permute.xlu1 %444  ;;  %v443_v16 = vpop.permute.xlu0 %442  ;;  %v437_v17 = vmul.f32 %v429_v53, %v407_v55  ;;  %v1952_v19 = vpack.c.bf16 %v436_v60, %v392_v63  ;;  %v1217_v33 = vrot.slane %v2349_v12, %v2238_v14  ;;  %v461_v34 = vrot.slane %v2322_v59, %v2219_v7 }
  0x97   : > { %v453_v26 = vsel %vm450_vm2, %v443_v16, %v445_v13  ;;  %v1186_v35 = vrot.slane %v2333_v4, %v2238_v14  ;;  %v517_v47 = vrot.slane %v2344_v11, %v2238_v14  ;;  %v1209_v48 = vrot.slane %v2349_v12, %v2226_v9  ;;  %v1386_v11 = vld [vmem:[%s2858_s1 + $0x8] sm:$0xff] }
  0x98   : > { %1068 = vrot.lane.b32.xlu1 %v2159_v2, %s2088_s10  ;;  %v1950_v22 = vpack.c.bf16 %v437_v17, %v393_v10  ;;  %v479_v36 = vmul.f32 %v465_v15, %v453_v26  ;;  %v2381_v37 = vmul.f32 %v1174_v18, %v453_v26  ;;  %v1213_v52 = vrot.slane %v2349_v12, %v2261_v24  ;;  %s344_s10 = scalar_lea.vmem %s2863_s6, %s1896_s25 }
  0x99   : > { %1024 = vrot.lane.b32.xlu0 %v2159_v2, %s2087_s9  ;;  %v469_v53 = vrot.slane %v2322_v59, %v2261_v24  ;;  %v473_v60 = vrot.slane %v2322_v59, %v2238_v14  ;;  %v1178_v63 = vrot.slane %v2333_v4, %v2226_v9  ;;  %v1182_v10 = vrot.slane %v2333_v4, %v2261_v24 }
  0x9a   : > { %1951 = vmatprep.subr.bf16.mxu1 %v1950_v22  ;;  %v489_v27 = vpop.permute.xlu1 %488  ;;  %v487_v28 = vpop.permute.xlu0 %486  ;;  %1892 = vmatprep.mubr.msk.f32.mxu0 %vm1501_vm4, %v1386_v11  ;;  %v2427_v22 = vld [vmem:[%s2859_s2 + $0x4] ss:$8 sm:$0xf]  ;;  %vm1070_vm1 = vcmp.lt.s32.totalorder %v2215_v6, 119  ;;  %v2881_v6 = vpack.c.bf16 %v2293_v44, %v2295_v46 }
  0x9b   : > { %1953 = vmatpush1.bf16.msra.mxu1 %v1952_v19  ;;  %v497_v32 = vsel %vm494_vm3, %v487_v28, %v489_v27  ;;  %1893 = vmatprep.mubr.msk.f32.mxu1 %vm1501_vm4, %v1386_v11 }
  0x9c   : > { %v523_v39 = vmul.f32 %v509_v23, %v497_v32  ;;  %v2383_v40 = vmul.f32 %v1205_v25, %v497_v32  ;;  %v2432_v23 = vld [vmem:[%s2859_s2 + $0x46] ss:$8 sm:$0xf] }
  0x9e   : > { %v493_v42 = vpop.permute.xlu1 %492  ;;  %v449_v43 = vpop.permute.xlu0 %448  ;;  %v1902_v45 = vpack.c.bf16 %v523_v39, %v479_v36  ;;  %v553_v39 = vrot.slane %v2427_v22, %v2226_v9 }
  0x9f   : > { %v498_v50 = vsel %vm494_vm3, %v493_v42, %v487_v28  ;;  %v454_v51 = vsel %vm450_vm2, %v449_v43, %v443_v16 }
  0xa0   : > { %v522_v55 = vmul.f32 %v505_v31, %v498_v50  ;;  %v2401_v56 = vmul.f32 %v1217_v33, %v498_v50  ;;  %v478_v57 = vmul.f32 %v461_v34, %v454_v51  ;;  %v2403_v58 = vmul.f32 %v1186_v35, %v454_v51  ;;  %1903 = vmatprep.subr.bf16.mxu0 %v1902_v45  ;;  %v2445_v34 = vld [vmem:[%s2859_s2 + $0x5] ss:$8 sm:$0xf]  ;;  %v2450_v35 = vld [vmem:[%s2859_s2 + $0x47] ss:$8 sm:$0xf] }
  0xa1   : > { %v597_v50 = vrot.slane %v2445_v34, %v2226_v9  ;;  %v1267_v51 = vrot.slane %v2450_v35, %v2219_v7  ;;  %v1279_v11 = vrot.slane %v2450_v35, %v2238_v14 }
  0xa2   : > { %v491_v12 = vpop.permute.xlu1 %490  ;;  %v447_v15 = vpop.permute.xlu0 %446  ;;  %v1904_v16 = vpack.c.bf16 %v522_v55, %v478_v57  ;;  %v2089_v55 = vmov 0   ;;  %v2885_v44 = vpack.c.bf16 %v2401_v56, %v2403_v58 }
  0xa3   : > { %v495_v59 = vsel %vm494_vm3, %v491_v12, %v493_v42  ;;  %v496_v18 = vsel %vm494_vm3, %v489_v27, %v491_v12  ;;  %v451_v4 = vsel %vm450_vm2, %v447_v15, %v449_v43  ;;  %v452_v19 = vsel %vm450_vm2, %v445_v13, %v447_v15  ;;  %2044 = vset.pattern.permute.xlu0 %v2089_v55 }
  0xa4   : > { %v524_v25 = vmul.f32 %v513_v41, %v496_v18  ;;  %v525_v26 = vmul.f32 %v517_v47, %v495_v59  ;;  %v2434_v28 = vmul.f32 %v1209_v48, %v496_v18  ;;  %v2436_v27 = vmul.f32 %v1213_v52, %v495_v59  ;;  %1905 = vmatpush1.bf16.msra.mxu0 %v1904_v16  ;;  %v1495_v48 = vld [vmem:[%s2860_s3] sm:$0xff] }
  0xa5   : > { %v480_v31 = vmul.f32 %v469_v53, %v452_v19  ;;  %v481_v32 = vmul.f32 %v473_v60, %v451_v4  ;;  %v2438_v13 = vmul.f32 %v1178_v63, %v452_v19  ;;  %v2440_v33 = vmul.f32 %v1182_v10, %v451_v4  ;;  %1498 = vperm.xlu0 %2044, %v1495_v48  }
  0xa6   : > { %v533_v36 = vpop.permute.xlu1 %532  ;;  %v1236_v41 = vrot.slane %v2432_v23, %v2219_v7  ;;  %v531_v42 = vpop.permute.xlu0 %530  ;;  %v593_v63 = vrot.slane %v2445_v34, %v2219_v7  ;;  %v549_v12 = vrot.slane %v2427_v22, %v2219_v7  ;;  %v1248_v15 = vrot.slane %v2432_v23, %v2238_v14  ;;  %2045 = vset.pattern.permute.xlu1 %v2089_v55 }
  0xa7   : > { %v1954_v43 = vpack.c.bf16 %v525_v26, %v481_v32  ;;  %v1956_v45 = vpack.c.bf16 %v524_v25, %v480_v31  ;;  %v541_v53 = vsel %vm538_vm5, %v531_v42, %v533_v36  ;;  %v601_v31 = vrot.slane %v2445_v34, %v2261_v24 }
  0xa8   : > { %v567_v16 = vmul.f32 %v553_v39, %v541_v53  ;;  %v2481_v59 = vmul.f32 %v1236_v41, %v541_v53  ;;  %v605_v32 = vrot.slane %v2445_v34, %v2238_v14  ;;  %v1275_v48 = vrot.slane %v2450_v35, %v2261_v24 }
  0xa9   : > { %1955 = vmatprep.subr.bf16.mxu1 %v1954_v43  ;;  %v557_v55 = vrot.slane %v2427_v22, %v2261_v24 }
  0xaa   : > { %1957 = vmatpush1.bf16.msra.mxu1 %v1956_v45  ;;  %v577_v57 = vpop.permute.xlu1 %576  ;;  %v575_v60 = vpop.permute.xlu0 %574  ;;  %v1271_v45 = vrot.slane %v2450_v35, %v2226_v9 }
  0xab   : > { %v585_v10 = vsel %vm582_vm6, %v575_v60, %v577_v57 }
  0xac   : > { %v611_v18 = vmul.f32 %v597_v50, %v585_v10  ;;  %v2483_v4 = vmul.f32 %v1267_v51, %v585_v10  ;;  %v1244_v10 = vrot.slane %v2432_v23, %v2261_v24 }
  0xae   : > { %v581_v19 = vpop.permute.xlu1 %580  ;;  %v537_v25 = vpop.permute.xlu0 %536  ;;  %v1906_v26 = vpack.c.bf16 %v611_v18, %v567_v16 }
  0xaf   : > { %v586_v39 = vsel %vm582_vm6, %v581_v19, %v575_v60  ;;  %v542_v41 = vsel %vm538_vm5, %v537_v25, %v531_v42  ;;  %v561_v60 = vrot.slane %v2427_v22, %v2238_v14  ;;  %v1240_v42 = vrot.slane %v2432_v23, %v2226_v9  ;;  %v2524_v23 = vld [vmem:[%s2859_s2 + $0x6] ss:$8 sm:$0xf] }
  0xb0   : > { %v610_v50 = vmul.f32 %v593_v63, %v586_v39  ;;  %v2499_v51 = vmul.f32 %v1279_v11, %v586_v39  ;;  %v566_v53 = vmul.f32 %v549_v12, %v542_v41  ;;  %v2501_v34 = vmul.f32 %v1248_v15, %v542_v41  ;;  %1907 = vmatprep.subr.bf16.mxu0 %v1906_v26 }
  0xb2   : > { %v579_v35 = vpop.permute.xlu1 %578  ;;  %v535_v63 = vpop.permute.xlu0 %534  ;;  %v1908_v11 = vpack.c.bf16 %v610_v50, %v566_v53  ;;  %v2889_v56 = vpack.c.bf16 %v2499_v51, %v2501_v34 }
  0xb3   : > { %v583_v15 = vsel %vm582_vm6, %v579_v35, %v581_v19  ;;  %v584_v16 = vsel %vm582_vm6, %v577_v57, %v579_v35  ;;  %v539_v22 = vsel %vm538_vm5, %v535_v63, %v537_v25  ;;  %v540_v18 = vsel %vm538_vm5, %v533_v36, %v535_v63  ;;  %v2533_v57 = vld [vmem:[%s2859_s2 + $0x60] ss:$8 sm:$0xf] }
  0xb4   : > { %v612_v26 = vmul.f32 %v601_v31, %v584_v16  ;;  %v613_v39 = vmul.f32 %v605_v32, %v583_v15  ;;  %v2526_v41 = vmul.f32 %v1271_v45, %v584_v16  ;;  %v2528_v50 = vmul.f32 %v1275_v48, %v583_v15  ;;  %1909 = vmatpush1.bf16.msra.mxu0 %v1908_v11  ;;  %v1873_v31 = vld [vmem:[%s2859_s2 + $0x7] ss:$8 sm:$0xf]  ;;  %v1890_v32 = vld [vmem:[%s2859_s2 + $0x61] ss:$8 sm:$0xf] }
  0xb5   : > { %v568_v19 = vmul.f32 %v557_v55, %v540_v18  ;;  %v569_v25 = vmul.f32 %v561_v60, %v539_v22  ;;  %v2535_v36 = vmul.f32 %v1240_v42, %v540_v18  ;;  %v2537_v53 = vmul.f32 %v1244_v10, %v539_v22 }
  0xb6   : > { %v621_v45 = vpop.permute.xlu1 %620  ;;  %v641_v48 = vrot.slane %v2524_v23, %v2226_v9  ;;  %v619_v55 = vpop.permute.xlu0 %618  ;;  %v1298_v60 = vrot.slane %v2533_v57, %v2219_v7  ;;  %v685_v63 = vrot.slane %v1873_v31, %v2226_v9  ;;  %v1329_v11 = vrot.slane %v1890_v32, %v2219_v7 }
  0xb7   : > { %v1958_v42 = vpack.c.bf16 %v613_v39, %v569_v25  ;;  %v1960_v10 = vpack.c.bf16 %v612_v26, %v568_v19  ;;  %v629_v16 = vsel %vm626_vm7, %v619_v55, %v621_v45  ;;  %v681_v26 = vrot.slane %v1873_v31, %v2219_v7 }
  0xb8   : > { %v1341_v19 = vrot.slane %v1890_v32, %v2238_v14  ;;  %v637_v25 = vrot.slane %v2524_v23, %v2219_v7  ;;  %v1310_v15 = vrot.slane %v2533_v57, %v2238_v14  ;;  %v655_v12 = vmul.f32 %v641_v48, %v629_v16 }
  0xb9   : > { %1959 = vmatprep.subr.bf16.mxu1 %v1958_v42  ;;  %v2567_v52 = vmul.f32 %v1298_v60, %v629_v16  ;;  %v689_v35 = vrot.slane %v1873_v31, %v2261_v24  ;;  %v693_v49 = vrot.slane %v1873_v31, %v2238_v14  ;;  %v1333_v60 = vrot.slane %v1890_v32, %v2226_v9 }
  0xba   : > { %1961 = vmatpush1.bf16.msra.mxu1 %v1960_v10  ;;  %v665_v22 = vpop.permute.xlu1 %664  ;;  %v663_v18 = vpop.permute.xlu0 %662  ;;  %v645_v31 = vrot.slane %v2524_v23, %v2261_v24 }
  0xbb   : > { %v673_v39 = vsel %vm670_vm8, %v663_v18, %v665_v22 }
  0xbc   : > { %v699_v42 = vmul.f32 %v685_v63, %v673_v39  ;;  %v2569_v10 = vmul.f32 %v1329_v11, %v673_v39  ;;  %v1337_v63 = vrot.slane %v1890_v32, %v2261_v24 }
  0xbe   : > { %v669_v43 = vpop.permute.xlu1 %668  ;;  %v625_v17 = vpop.permute.xlu0 %624  ;;  %v1910_v21 = vpack.c.bf16 %v699_v42, %v655_v12  ;;  %v1306_v42 = vrot.slane %v2533_v57, %v2261_v24 }
  0xbf   : > { %v674_v47 = vsel %vm670_vm8, %v669_v43, %v663_v18  ;;  %v630_v48 = vsel %vm626_vm7, %v625_v17, %v619_v55  ;;  %v649_v18 = vrot.slane %v2524_v23, %v2238_v14  ;;  %v1302_v55 = vrot.slane %v2533_v57, %v2226_v9 }
  0xc0   : > { %v698_v11 = vmul.f32 %v681_v26, %v674_v47  ;;  %v2581_v16 = vmul.f32 %v1341_v19, %v674_v47  ;;  %v654_v12 = vmul.f32 %v637_v25, %v630_v48  ;;  %v2583_v39 = vmul.f32 %v1310_v15, %v630_v48  ;;  %1911 = vmatprep.subr.bf16.mxu0 %v1910_v21 }
  0xc2   : > { %2871 = vst [vmem:[#allocation3_spill] sm:$0xff] %v2581_v16  ;;  %2872 = vst [vmem:[#allocation4_spill] sm:$0xff] %v2583_v39  ;;  %v667_v32 = vpop.permute.xlu1 %666  ;;  %v623_v26 = vpop.permute.xlu0 %622  ;;  %v1912_v47 = vpack.c.bf16 %v698_v11, %v654_v12 }
  0xc3   : > { %v671_v21 = vsel %vm670_vm8, %v667_v32, %v669_v43  ;;  %v672_v19 = vsel %vm670_vm8, %v665_v22, %v667_v32  ;;  %v627_v23 = vsel %vm626_vm7, %v623_v26, %v625_v17  ;;  %v628_v25 = vsel %vm626_vm7, %v621_v45, %v623_v26  ;;  %v1874_v17 = vld [vmem:[%s2859_s2 + $0x20] ss:$8 sm:$0xf]  ;;  %v1875_v45 = vld [vmem:[%s2859_s2 + $0x21] ss:$8 sm:$0xf] }
  0xc4   : > { %v700_v48 = vmul.f32 %v689_v35, %v672_v19  ;;  %v701_v57 = vmul.f32 %v693_v49, %v671_v21  ;;  %v2603_v54 = vmul.f32 %v1333_v60, %v672_v19  ;;  %v2605_v11 = vmul.f32 %v1337_v63, %v671_v21  ;;  %1913 = vmatpush1.bf16.msra.mxu0 %v1912_v47 }
  0xc5   : > { %v656_v12 = vmul.f32 %v645_v31, %v628_v25  ;;  %v657_v15 = vmul.f32 %v649_v18, %v627_v23  ;;  %v2607_v38 = vmul.f32 %v1302_v55, %v628_v25  ;;  %v2609_v43 = vmul.f32 %v1306_v42, %v627_v23 }
  0xc6   : > { %2873 = vst [vmem:[#allocation5_spill] sm:$0xff] %v2605_v11  ;;  %v709_v49 = vpop.permute.xlu1 %708  ;;  %v707_v35 = vpop.permute.xlu0 %706  ;;  %v729_v31 = vrot.slane %v1874_v17, %v2226_v9  ;;  %v773_v18 = vrot.slane %v1875_v45, %v2226_v9  ;;  %v769_v19 = vrot.slane %v1875_v45, %v2219_v7  ;;  %v725_v23 = vrot.slane %v1874_v17, %v2219_v7 }
  0xc7   : > { %2874 = vst [vmem:[#allocation6_spill] sm:$0xff] %v2609_v43  ;;  %v1962_v22 = vpack.c.bf16 %v701_v57, %v657_v15  ;;  %v1964_v60 = vpack.c.bf16 %v700_v48, %v656_v12  ;;  %v2627_v42 = vsel %vm714_vm9, %v707_v35, %v709_v49  ;;  %v781_v55 = vrot.slane %v1875_v45, %v2238_v14 }
  0xc8   : > { %2875 = vst [vmem:[#allocation7_spill] sm:$0xff] %v2627_v42  ;;  %v743_v15 = vmul.f32 %v729_v31, %v2627_v42  ;;  %v737_v63 = vrot.slane %v1874_v17, %v2238_v14 }
  0xc9   : > { %1963 = vmatprep.subr.bf16.mxu1 %v1962_v22 }
  0xca   : > { %1965 = vmatpush1.bf16.msra.mxu1 %v1964_v60  ;;  %v753_v32 = vpop.permute.xlu1 %752  ;;  %v751_v26 = vpop.permute.xlu0 %750  ;;  %v777_v60 = vrot.slane %v1875_v45, %v2261_v24 }
  0xcb   : > { %v761_v47 = vsel %vm758_vm10, %v751_v26, %v753_v32 }
  0xcc   : > { %v787_v21 = vmul.f32 %v773_v18, %v761_v47  ;;  %v733_v47 = vrot.slane %v1874_v17, %v2261_v24 }
  0xcd   : > { %v2897_v51 = vld [vmem:[#allocation5_spill] sm:$0xff] }
  0xce   : > { %v757_v25 = vpop.permute.xlu1 %756  ;;  %v713_v48 = vpop.permute.xlu0 %712  ;;  %v1914_v57 = vpack.c.bf16 %v787_v21, %v743_v15  ;;  %v2898_v34 = vld [vmem:[#allocation6_spill] sm:$0xff] }
  0xcf   : > { %v762_v12 = vsel %vm758_vm10, %v757_v25, %v751_v26  ;;  %v2638_v22 = vsel %vm714_vm9, %v713_v48, %v707_v35 }
  0xd0   : > { %2876 = vst [vmem:[#allocation8_spill] sm:$0xff] %v2638_v22  ;;  %v786_v31 = vmul.f32 %v769_v19, %v762_v12  ;;  %v742_v18 = vmul.f32 %v725_v23, %v2638_v22  ;;  %1915 = vmatprep.subr.bf16.mxu0 %v1914_v57 }
  0xd2   : > { %v755_v15 = vpop.permute.xlu1 %754  ;;  %v711_v21 = vpop.permute.xlu0 %710  ;;  %v1916_v20 = vpack.c.bf16 %v786_v31, %v742_v18 }
  0xd3   : > { %v759_v26 = vsel %vm758_vm10, %v755_v15, %v757_v25  ;;  %v760_v35 = vsel %vm758_vm10, %v753_v32, %v755_v15  ;;  %v2651_v45 = vsel %vm714_vm9, %v711_v21, %v713_v48  ;;  %v2655_v19 = vsel %vm714_vm9, %v709_v49, %v711_v21  ;;  %v1876_v25 = vld [vmem:[%s2859_s2 + $0x22] ss:$8 sm:$0xf]  ;;  %v1877_v32 = vld [vmem:[%s2859_s2 + $0x23] ss:$8 sm:$0xf] }
  0xd4   : > { %2877 = vst [vmem:[#allocation9_spill] sm:$0xff] %v2651_v45  ;;  %v788_v23 = vmul.f32 %v777_v60, %v760_v35  ;;  %v789_v57 = vmul.f32 %v781_v55, %v759_v26  ;;  %v744_v17 = vmul.f32 %v733_v47, %v2655_v19  ;;  %v745_v12 = vmul.f32 %v737_v63, %v2651_v45 }
  0xd5   : > { %1917 = vmatpush1.bf16.msra.mxu0 %v1916_v20  ;;  %v817_v55 = vrot.slane %v1876_v25, %v2226_v9  ;;  %v861_v20 = vrot.slane %v1877_v32, %v2226_v9  ;;  %v857_v35 = vrot.slane %v1877_v32, %v2219_v7  ;;  %v865_v45 = vrot.slane %v1877_v32, %v2261_v24 }
  0xd6   : > { %v797_v48 = vpop.permute.xlu1 %796  ;;  %v795_v49 = vpop.permute.xlu0 %794  ;;  %v1966_v31 = vpack.c.bf16 %v789_v57, %v745_v12  ;;  %v1968_v60 = vpack.c.bf16 %v788_v23, %v744_v17  ;;  %v813_v23 = vrot.slane %v1876_v25, %v2219_v7  ;;  %v869_v43 = vrot.slane %v1877_v32, %v2238_v14 }
  0xd7   : > { %v805_v63 = vsel %vm802_vm11, %v795_v49, %v797_v48 }
  0xd8   : > { %1967 = vmatprep.subr.bf16.mxu1 %v1966_v31  ;;  %v831_v21 = vmul.f32 %v817_v55, %v805_v63  ;;  %v1878_v55 = vld [vmem:[%s2859_s2 + $0x24] ss:$8 sm:$0xf] }
  0xd9   : > { %1969 = vmatpush1.bf16.msra.mxu1 %v1968_v60 }
  0xda   : > { %v841_v18 = vpop.permute.xlu1 %840  ;;  %v839_v47 = vpop.permute.xlu0 %838 }
  0xdb   : > { %v849_v15 = vsel %vm846_vm12, %v839_v47, %v841_v18 }
  0xdc   : > { %v875_v26 = vmul.f32 %v861_v20, %v849_v15  ;;  %v821_v15 = vrot.slane %v1876_v25, %v2261_v24 }
  0xde   : > { %v845_v57 = vpop.permute.xlu1 %844  ;;  %v801_v17 = vpop.permute.xlu0 %800  ;;  %v1918_v12 = vpack.c.bf16 %v875_v26, %v831_v21  ;;  %v825_v21 = vrot.slane %v1876_v25, %v2238_v14 }
  0xdf   : > { %v850_v31 = vsel %vm846_vm12, %v845_v57, %v839_v47  ;;  %v806_v60 = vsel %vm802_vm11, %v801_v17, %v795_v49  ;;  %v905_v49 = vrot.slane %v1878_v55, %v2226_v9 }
  0xe0   : > { %v874_v20 = vmul.f32 %v857_v35, %v850_v31  ;;  %v830_v63 = vmul.f32 %v813_v23, %v806_v60  ;;  %1919 = vmatprep.subr.bf16.mxu0 %v1918_v12 }
  0xe2   : > { %v843_v26 = vpop.permute.xlu1 %842  ;;  %v799_v47 = vpop.permute.xlu0 %798  ;;  %v1920_v11 = vpack.c.bf16 %v874_v20, %v830_v63 }
  0xe3   : > { %v847_v32 = vsel %vm846_vm12, %v843_v26, %v845_v57  ;;  %v848_v22 = vsel %vm846_vm12, %v841_v18, %v843_v26  ;;  %v803_v35 = vsel %vm802_vm11, %v799_v47, %v801_v17  ;;  %v804_v23 = vsel %vm802_vm11, %v797_v48, %v799_v47 }
  0xe4   : > { %v876_v25 = vmul.f32 %v865_v45, %v848_v22  ;;  %v877_v12 = vmul.f32 %v869_v43, %v847_v32  ;;  %v832_v31 = vmul.f32 %v821_v15, %v804_v23  ;;  %v833_v60 = vmul.f32 %v825_v21, %v803_v35  ;;  %1921 = vmatpush1.bf16.msra.mxu0 %v1920_v11 }
  0xe5   : > { %v909_v18 = vrot.slane %v1878_v55, %v2261_v24  ;;  %v901_v17 = vrot.slane %v1878_v55, %v2219_v7  ;;  %v913_v48 = vrot.slane %v1878_v55, %v2238_v14 }
  0xe6   : > { %v885_v20 = vpop.permute.xlu1 %884  ;;  %v883_v63 = vpop.permute.xlu0 %882  ;;  %v1970_v39 = vpack.c.bf16 %v877_v12, %v833_v60  ;;  %v1972_v16 = vpack.c.bf16 %v876_v25, %v832_v31 }
  0xe7   : > { %v893_v57 = vsel %vm890_vm13, %v883_v63, %v885_v20 }
  0xe8   : > { %v919_v42 = vmul.f32 %v905_v49, %v893_v57  ;;  %1971 = vmatprep.subr.bf16.mxu1 %v1970_v39 }
  0xe9   : > { %1973 = vmatpush1.bf16.msra.mxu1 %v1972_v16  ;;  %v1879_v16 = vld [vmem:[%s2859_s2 + $0x26] ss:$8 sm:$0xf] }
  0xea   : > { %v887_v43 = vpop.permute.xlu1 %886  ;;  %v889_v22 = vpop.permute.xlu0 %888  ;;  %v1922_v11 = vpack.c.bf16 %v2155_v1, %v919_v42  ;;  %v1880_v1 = vld [vmem:[%s2859_s2 + $0x27] ss:$8 sm:$0xf]  ;;  %v953_v23 = vrot.slane %v1879_v16, %v2226_v9 }
  0xeb   : > { %v892_v45 = vsel %vm890_vm13, %v885_v20, %v887_v43  ;;  %v891_v15 = vsel %vm890_vm13, %v887_v43, %v889_v22  ;;  %v894_v39 = vsel %vm890_vm13, %v889_v22, %v883_v63  ;;  %v997_v25 = vrot.slane %v1880_v1, %v2226_v9 }
  0xec   : > { %v920_v21 = vmul.f32 %v909_v18, %v892_v45  ;;  %v918_v26 = vmul.f32 %v901_v17, %v894_v39  ;;  %v921_v47 = vmul.f32 %v913_v48, %v891_v15  ;;  %1923 = vmatprep.subr.bf16.mxu0 %v1922_v11  ;;  %v949_v63 = vrot.slane %v1879_v16, %v2219_v7 }
  0xed   : > { %v1001_v22 = vrot.slane %v1880_v1, %v2261_v24  ;;  %v1005_v11 = vrot.slane %v1880_v1, %v2238_v14  ;;  %v957_v39 = vrot.slane %v1879_v16, %v2261_v24 }
  0xee   : > { %v935_v42 = vpop.permute.xlu1 %934  ;;  %v933_v55 = vpop.permute.xlu0 %932  ;;  %v1924_v49 = vpack.c.bf16 %v2151_v0, %v918_v26  ;;  %v1974_v32 = vpack.c.bf16 %v2159_v2, %v921_v47  ;;  %v1976_v35 = vpack.c.bf16 %v2163_v3, %v920_v21  ;;  %v993_v3 = vrot.slane %v1880_v1, %v2219_v7 }
  0xef   : > { %v940_v12 = vsel %vm938_vm14, %v933_v55, %v935_v42  ;;  %v961_v21 = vrot.slane %v1879_v16, %v2238_v14 }
  0xf0   : > { %1925 = vmatpush1.bf16.msra.mxu0 %v1924_v49  ;;  %1975 = vmatprep.subr.bf16.mxu1 %v1974_v32  ;;  %v967_v2 = vmul.f32 %v953_v23, %v940_v12 }
  0xf1   : > { %1977 = vmatpush1.bf16.msra.mxu1 %v1976_v35 }
  0xf2   : > { %v979_v31 = vpop.permute.xlu1 %978  ;;  %v977_v60 = vpop.permute.xlu0 %976 }
  0xf3   : > { %v984_v0 = vsel %vm982_vm15, %v977_v60, %v979_v31 }
  0xf4   : > { %v1011_v20 = vmul.f32 %v997_v25, %v984_v0  ;;  %v1881_v0 = vld [vmem:[%s2859_s2 + $0x40] ss:$8 sm:$0xf] }
  0xf6   : > { %v975_v57 = vpop.permute.xlu1 %974  ;;  %v931_v18 = vpop.permute.xlu0 %930  ;;  %v1926_v17 = vpack.c.bf16 %v1011_v20, %v967_v2 }
  0xf7   : > { %v985_v48 = vsel %vm982_vm15, %v975_v57, %v977_v60  ;;  %v941_v43 = vsel %vm938_vm14, %v931_v18, %v933_v55 }
  0xf8   : > { %v1010_v45 = vmul.f32 %v993_v3, %v985_v48  ;;  %v966_v15 = vmul.f32 %v949_v63, %v941_v43  ;;  %1927 = vmatprep.subr.bf16.mxu0 %v1926_v17  ;;  %v1041_v3 = vrot.slane %v1881_v0, %v2226_v9 }
  0xfa   : > { %v981_v26 = vpop.permute.xlu1 %980  ;;  %v937_v47 = vpop.permute.xlu0 %936  ;;  %v1928_v49 = vpack.c.bf16 %v1010_v45, %v966_v15  ;;  %v1037_v45 = vrot.slane %v1881_v0, %v2219_v7 }
  0xfb   : > { %v983_v32 = vsel %vm982_vm15, %v979_v31, %v981_v26  ;;  %v986_v55 = vsel %vm982_vm15, %v981_v26, %v975_v57  ;;  %v939_v35 = vsel %vm938_vm14, %v935_v42, %v937_v47  ;;  %v942_v1 = vsel %vm938_vm14, %v937_v47, %v931_v18  ;;  %v1882_v42 = vld [vmem:[%s2859_s2 + $0x41] ss:$8 sm:$0xf] }
  0xfc   : > { %v1012_v23 = vmul.f32 %v1001_v22, %v983_v32  ;;  %v1013_v25 = vmul.f32 %v1005_v11, %v986_v55  ;;  %v968_v12 = vmul.f32 %v957_v39, %v939_v35  ;;  %v969_v60 = vmul.f32 %v961_v21, %v942_v1  ;;  %1929 = vmatpush1.bf16.msra.mxu0 %v1928_v49 }
  0xfd   : > { %v1085_v63 = vrot.slane %v1882_v42, %v2226_v9  ;;  %v1081_v43 = vrot.slane %v1882_v42, %v2219_v7  ;;  %v1089_v32 = vrot.slane %v1882_v42, %v2261_v24  ;;  %v1093_v55 = vrot.slane %v1882_v42, %v2238_v14 }
  0xfe   : > { %v1023_v16 = vpop.permute.xlu1 %1022  ;;  %v1021_v31 = vpop.permute.xlu0 %1020  ;;  %v1978_v2 = vpack.c.bf16 %v1013_v25, %v969_v60  ;;  %v1980_v20 = vpack.c.bf16 %v1012_v23, %v968_v12  ;;  %v1045_v1 = vrot.slane %v1881_v0, %v2261_v24  ;;  %v1049_v23 = vrot.slane %v1881_v0, %v2238_v14 }
  0xff   : > { %v1028_v57 = vsel %vm1026_vm0, %v1021_v31, %v1023_v16  ;;  %v2878_v0 = vpack.c.bf16 %v2324_v61, %v2335_v5  ;;  %v2882_v61 = vpack.c.bf16 %v2383_v40, %v2381_v37  ;;  %v2883_v5 = vpack.c.bf16 %v2526_v41, %v2535_v36 }
 0x100   : > { %1979 = vmatprep.subr.bf16.mxu1 %v1978_v2  ;;  %v1055_v22 = vmul.f32 %v1041_v3, %v1028_v57  ;;  %v2886_v37 = vpack.c.bf16 %v2483_v4, %v2481_v59  ;;  %v2887_v40 = vpack.c.bf16 %v2603_v54, %v2607_v38  ;;  %v2891_v38 = vpack.c.bf16 %v2528_v50, %v2537_v53  ;;  %v2892_v54 = vld [vmem:[#allocation7_spill] sm:$0xff]  ;;  %v2896_v4 = vld [vmem:[#allocation8_spill] sm:$0xff]  ;;  %v2900_v50 = vld [vmem:[#allocation9_spill] sm:$0xff] }
 0x101   : > { %1981 = vmatpush1.bf16.msra.mxu1 %v1980_v20  ;;  %v1385_v59 = vld [vmem:[%s2858_s1] sm:$0xff]  ;;  %v2899_v41 = vpack.c.bf16 %v2897_v51, %v2898_v34 }
 0x102   : > { %v1067_v18 = vpop.permute.xlu1 %1066 }
 0x103   : > { %v1065_v17 = vpop.permute.xlu0 %1064 }
 0x104   : > { %v1072_v48 = vsel %vm1070_vm1, %v1065_v17, %v1067_v18 }
 0x105   : > { %v1099_v11 = vmul.f32 %v1085_v63, %v1072_v48 }
 0x106   : > { %v1063_v15 = vpop.permute.xlu1 %1062 }
 0x107   : > { %v1073_v39 = vsel %vm1070_vm1, %v1063_v15, %v1065_v17  ;;  %v1019_v21 = vpop.permute.xlu0 %1018  ;;  %v1930_v26 = vpack.c.bf16 %v1099_v11, %v1055_v22 }
 0x108   : > { %v1098_v47 = vmul.f32 %v1081_v43, %v1073_v39  ;;  %v1029_v49 = vsel %vm1026_vm0, %v1019_v21, %v1021_v31  ;;  %v2879_v43 = vpack.c.bf16 %v2271_v29, %v2273_v30  ;;  %v2884_v29 = vpack.c.bf16 %v2326_v62, %v2337_v8  ;;  %v1891_v30 = vld [vmem:[%s2859_s2 + $0x62] ss:$8 sm:$0xf] }
 0x109   : > { %v1054_v35 = vmul.f32 %v1037_v45, %v1029_v49  ;;  %1931 = vmatprep.subr.bf16.mxu0 %v1930_v26  ;;  %v1364_v46 = vrot.slane %v1891_v30, %v2226_v9  ;;  %v2888_v62 = vpack.c.bf16 %v2436_v27, %v2440_v33  ;;  %v1360_v8 = vrot.slane %v1891_v30, %v2219_v7  ;;  %v2893_v7 = vld [vmem:[#allocation3_spill] sm:$0xff] }
 0x10a   : > { %v1069_v25 = vpop.permute.xlu1 %1068  ;;  %v1372_v58 = vrot.slane %v1891_v30, %v2238_v14  ;;  %v1368_v14 = vrot.slane %v1891_v30, %v2261_v24  ;;  %v1674_v49 = vld [vmem:[%s2861_s4] sm:$0xff] }
 0x10b   : > { %v1071_v12 = vsel %vm1070_vm1, %v1067_v18, %v1069_v25  ;;  %v1074_v60 = vsel %vm1070_vm1, %v1069_v25, %v1063_v15  ;;  %v1025_v2 = vpop.permute.xlu0 %1024  ;;  %v1932_v20 = vpack.c.bf16 %v1098_v47, %v1054_v35  ;;  %v1378_v9 = vmul.f32 %v1364_v46, %v2655_v19 }
 0x10c   : > { %v1100_v31 = vmul.f32 %v1089_v32, %v1071_v12  ;;  %v1101_v3 = vmul.f32 %v1093_v55, %v1074_v60  ;;  %v1027_v42 = vsel %vm1026_vm0, %v1023_v16, %v1025_v2  ;;  %v1030_v63 = vsel %vm1026_vm0, %v1025_v2, %v1019_v21 }
 0x10d   : > { %v1056_v57 = vmul.f32 %v1045_v1, %v1027_v42  ;;  %v1057_v17 = vmul.f32 %v1049_v23, %v1030_v63  ;;  %1933 = vmatpush1.bf16.msra.mxu0 %v1932_v20  ;;  %v2880_v16 = vpack.c.bf16 %v2434_v28, %v2438_v13  ;;  %v2890_v28 = vpack.c.bf16 %v2569_v10, %v2567_v52  ;;  %v2894_v13 = vld [vmem:[#allocation4_spill] sm:$0xff]  ;;  %v1684_v63 = vld [vmem:[%s2862_s5] sm:$0xff] }
 0x10e   : > { %1935 = vmatprep.subr.bf16.mxu0 %v2878_v0  ;;  %v1377_v27 = vmul.f32 %v1360_v8, %v2892_v54  ;;  %v2895_v33 = vpack.c.bf16 %v2893_v7, %v2894_v13  ;;  %v1380_v52 = vmul.f32 %v1372_v58, %v2896_v4  ;;  %v1379_v36 = vmul.f32 %v1368_v14, %v2900_v50 }
 0x10f   : > { %v1982_v18 = vpack.c.bf16 %v1101_v3, %v1057_v17  ;;  %v1984_v48 = vpack.c.bf16 %v1100_v31, %v1056_v57 }
 0x111   : > { %1937 = vmatpush1.bf16.msra.mxu0 %v2879_v43  ;;  %1983 = vmatprep.subr.bf16.mxu1 %v1982_v18 }
 0x112   : > { %1939 = vmatprep.subr.bf16.mxu0 %v2880_v16  ;;  %1985 = vmatpush1.bf16.msra.mxu1 %v1984_v48 }
 0x113   : > { %1987 = vmatprep.subr.bf16.mxu1 %v2881_v6 }
 0x115   : > { %1941 = vmatpush1.bf16.msra.mxu0 %v2882_v61 }
 0x116   : > { %1943 = vmatprep.subr.bf16.mxu0 %v2883_v5  ;;  %1989 = vmatpush1.bf16.msra.mxu1 %v2884_v29 }
 0x117   : > { %1991 = vmatprep.subr.bf16.mxu1 %v2885_v44 }
 0x119   : > { %1945 = vmatpush1.bf16.msra.mxu0 %v2886_v37 }
 0x11a   : > { %1947 = vmatprep.subr.bf16.mxu0 %v2887_v40  ;;  %1993 = vmatpush1.bf16.msra.mxu1 %v2888_v62 }
 0x11b   : > { %1995 = vmatprep.subr.bf16.mxu1 %v2889_v56 }
 0x11d   : > { %1949 = vmatpush1.bf16.msra.mxu0 %v2890_v28 }
 0x11e   : > { %1557 = vmatprep.subr.mxu0 %v1378_v9  ;;  %1997 = vmatpush1.bf16.msra.mxu1 %v2891_v38 }
 0x11f   : > { %1999 = vmatprep.subr.bf16.mxu1 %v2895_v33 }
 0x121   : > { %1558 = vmatpush1.msra.mxu0 %v1377_v27 }
 0x122   : > { %2001 = vmatpush1.bf16.msra.mxu1 %v2899_v41  ;;  %1570 = vmatmul.mubr.f32.vlgmr.msra.gmra.mrb[0].mxu0 %v1385_v59 }
 0x123   : > { %1628 = vmatprep.subr.mxu1 %v1380_v52 }
 0x124   : > { %v1499_v53 = vpop.permute.xlu0 %1498 }
 0x126   : > { %1629 = vmatpush1.msra.mxu1 %v1379_v36 }
 0x127   : > { %1641 = vmatmul.mubr.f32.vlgmr.msra.gmra.mrb[0].mxu1 %v1385_v59 }
 0x1f5   : > { %v1571_v10 = vpop.f32.mrb[0].mxu0 }
 0x1f6   : > { %v1573_v19 = vpop.f32.mrb[1].mxu0  ;;  %v1572_v22 = vadd.f32 %v1571_v10, %v1499_v53 }
 0x1f7   : > { %v1574_v11 = vadd.f32 %v1573_v19, %v1499_v53 }
 0x1f9   : > { %v1647_v45 = vadd.f32 %v1574_v11, %v1572_v22 }
 0x1fa   : > { %v1642_v24 = vpop.f32.mrb[0].mxu1 }
 0x1fb   : > { %v1643_v15 = vadd.f32 %v1642_v24, %v1499_v53  ;;  %v1644_v39 = vpop.f32.mrb[1].mxu1 }
 0x1fc   : > { %v1645_v21 = vadd.f32 %v1644_v39, %v1499_v53 }
 0x1fd   : > { %v1648_v26 = vadd.f32 %v1647_v45, %v1643_v15 }
 0x1ff   : > { %v1649_v47 = vadd.f32 %v1648_v26, %v1645_v21 }
 0x201   : > { %1650 = vadd.xlane.f32.xlu1 %v1649_v47 }
 0x212   : > { %1677 = vperm.xlu1 %2045, %v1674_v49  }
 0x28e   : > { %v1651_v32 = vpop.xlane.xlu1 %1650 }
 0x28f   : > { %v1653_v55 = vmul.f32 0.001953125, %v1651_v32 }
 0x291   : > { %v1654_v35 = vsub.f32 %v1572_v22, %v1653_v55  ;;  %v1655_v1 = vsub.f32 %v1574_v11, %v1653_v55  ;;  %v1656_v23 = vsub.f32 %v1643_v15, %v1653_v55  ;;  %v1657_v25 = vsub.f32 %v1645_v21, %v1653_v55 }
 0x292   : > { %v1678_v48 = vpop.permute.xlu1 %1677 }
 0x293   : > { %v1658_v12 = vmul.f32 %v1654_v35, %v1654_v35  ;;  %v1659_v60 = vmul.f32 %v1655_v1, %v1655_v1  ;;  %v1660_v2 = vmul.f32 %v1656_v23, %v1656_v23  ;;  %v1661_v31 = vmul.f32 %v1657_v25, %v1657_v25 }
 0x295   : > { %v1662_v20 = vadd.f32 %v1659_v60, %v1658_v12 }
 0x297   : > { %v1663_v3 = vadd.f32 %v1662_v20, %v1660_v2 }
 0x299   : > { %v1664_v42 = vadd.f32 %v1663_v3, %v1661_v31 }
 0x29b   : > { %1665 = vadd.xlane.f32.xlu0 %v1664_v42 }
 0x2b1   : > { %1687 = vperm.xlu0 %2044, %v1684_v63  }
 0x328   : > { %v1666_v57 = vpop.xlane.xlu0 %1665 }
 0x329   : > { %v1667_v17 = vmul.f32 0.001953125, %v1666_v57 }
 0x32b   : > { %v1668_v0 = vadd.f32 1e-05, %v1667_v17 }
 0x32d   : > { %2046 = vrsqrt.f32 %v1668_v0 }
 0x330   : > { %v1688_v46 = vpop.permute.xlu0 %1687 }
 0x337   : > { %v2047_v18 = vpop.eup %2046 }
 0x338   : > { %v1670_v43 = vmul.f32 %v2047_v18, %v1654_v35  ;;  %v1671_v16 = vmul.f32 %v2047_v18, %v1655_v1  ;;  %v1672_v6 = vmul.f32 %v2047_v18, %v1656_v23  ;;  %v1673_v61 = vmul.f32 %v2047_v18, %v1657_v25 }
 0x33a   : > { %v1680_v5 = vmul.f32 %v1678_v48, %v1670_v43  ;;  %v1681_v29 = vmul.f32 %v1678_v48, %v1671_v16  ;;  %v1682_v30 = vmul.f32 %v1678_v48, %v1672_v6  ;;  %v1683_v44 = vmul.f32 %v1678_v48, %v1673_v61 }
 0x33c   : > { %v1690_v37 = vadd.f32 %v1688_v46, %v1680_v5  ;;  %v1691_v40 = vadd.f32 %v1688_v46, %v1681_v29  ;;  %v1692_v62 = vadd.f32 %v1688_v46, %v1682_v30  ;;  %v1693_v8 = vadd.f32 %v1688_v46, %v1683_v44 }
 0x33e   : > { %vm1694_vm2 = vcmp.ge.f32.partialorder %v1690_v37, 0.0  ;;  %vm1695_vm3 = vcmp.ge.f32.partialorder %v1691_v40, 0.0  ;;  %vm1696_vm4 = vcmp.ge.f32.partialorder %v1692_v62, 0.0  ;;  %vm1697_vm5 = vcmp.ge.f32.partialorder %v1693_v8, 0.0 }
 0x33f   : > { %v1698_v56 = vmul.f32 0.01, %v1690_v37  ;;  %v1699_v9 = vmul.f32 0.01, %v1691_v40  ;;  %v1700_v58 = vmul.f32 0.01, %v1692_v62 }
 0x340   : > { %v1701_v28 = vmul.f32 0.01, %v1693_v8 }
 0x341   : > { %v1702_v38 = vsel %vm1694_vm2, %v1690_v37, %v1698_v56  ;;  %v1703_v54 = vsel %vm1695_vm3, %v1691_v40, %v1699_v9  ;;  %v1704_v27 = vsel %vm1696_vm4, %v1692_v62, %v1700_v58 }
 0x342   : > { %v1705_v7 = vsel %vm1697_vm5, %v1693_v8, %v1701_v28  ;;  %1706 = vst [vmem:[%s344_s10] sm:$0xff] %v1702_v38  ;;  %1707 = vst [vmem:[%s344_s10 + $0x8] sm:$0xff] %v1703_v54 }
 0x343   : > { %1708 = vst [vmem:[%s344_s10 + $0x10] sm:$0xff] %v1704_v27  ;;  %1709 = vst [vmem:[%s344_s10 + $0x18] sm:$0xff] %v1705_v7 }
 0x344 PF: > { %s16_s23 = sadd.s32 1, %s2070_s23   ;;  %s2901_s21 = smov %s2066_s22 }
 0x345   : > { %p13_p5 = scmp.ge.s32.totalorder %s16_s23, 4   ;;  %s2902_s22 = smov %s2904_s24 }
 0x347   :  { %15 = sbr.rel (!%p13_p5) target bundleno = 2 (0x2), region = 115 }

</bundles_post_ra>
